<compile_context>
chip_gen: v7x
topology: tpu7x:2x2x1
jax: 0.10.0
libtpu: 0.0.40
codegen_flags: <defaults>
</compile_context>

<pallas_src>
import functools

import jax
import jax.numpy as jnp
from jax.experimental import pallas as pl
from jax.experimental.pallas import tpu as pltpu


def _pack_blockdiag(w_hwio, width):
    """Pack a (3, 3, Cin, Cout) conv weight into a (9*W*Cin, W*Cout) matrix.

    Row index  = tap*(W*Cin) + j*Cin + ci        (tap = dh*3 + dw)
    Col index  = k*Cout + co
    Value      = w[dh, dw, ci, co] if j == k else 0
    so that (H, 9*W*Cin) tap-slab  @  packed  ->  (H, W*Cout) conv output.
    """
    kh, kw, cin, cout = w_hwio.shape
    wk = w_hwio.reshape(kh * kw, cin, cout)               # (9, Cin, Cout)
    eye = jnp.eye(width, dtype=w_hwio.dtype)              # (W, W)
    bd = jnp.einsum("tio,jk->tjiko", wk, eye)             # (9, W, Cin, W, Cout)
    return bd.reshape(kh * kw * width * cin, width * cout)


def _fpb_kernel(x_ref, w1_ref, b1_ref, w2_ref, w3_ref, o_ref,
                xp1, xp2, slab1, slab2, *, H, W, Cin, Cout):
    """Fused 3-conv-block kernel; one grid step == one image.

    x_ref  : (1, H, W*Cin)            input image, lane-dense
    w*_ref : (9*W*C, W*Cout)          W-block-diagonal packed conv weights
    b1_ref : (1, W*Cout)              folded BN bias, tiled over W
    o_ref  : (1, H, W*Cout)           lane-dense output
    xp1/xp2: padded activation scratch, (H+2, (W+2)*C)
    slab1/2: 9-tap packed-K slab scratch, (H, 9*W*C)
    """
    # In-kernel zero padding: clear the (tiny) padded buffers, then overwrite
    # the interior each block.  Borders stay zero -> implicit padding=1.
    xp1[...] = jnp.zeros_like(xp1)
    xp2[...] = jnp.zeros_like(xp2)

    def conv(xp, slab, c, w_ref, act2d):
        """3x3/stride1/pad1 conv of act2d (H, W*c) -> (H, W*Cout), one matmul."""
        wc = W * c
        # write the activation into the interior of the zero-padded buffer
        xp[1:H + 1, c:(W + 1) * c] = act2d
        # gather the 9 taps into the packed-K slab; each tap is a plain shifted
        # 2-D slice (no reshape / relayout).
        for dh in range(3):
            for dw in range(3):
                t = dh * 3 + dw
                slab[:, t * wc:(t + 1) * wc] = xp[dh:dh + H, dw * c:dw * c + wc]
        # single MXU matmul: (H, 9*W*c) x (9*W*c, W*Cout) -> (H, W*Cout)
        return jnp.dot(slab[...], w_ref[...], preferred_element_type=jnp.float32)

    x2d = x_ref[0]                                         # (H, W*Cin)

    # Block 1: conv (BN scale pre-folded into w1) -> +bias -> ReLU
    y = conv(xp1, slab1, Cin, w1_ref, x2d)
    y = jnp.maximum(y + b1_ref[...], 0.0)

    # Block 2: conv -> +residual (VMEM-resident y) -> ReLU
    z = conv(xp2, slab2, Cout, w2_ref, y)
    z = jnp.maximum(z + y, 0.0)

    # Block 3: conv -> +residual -> ReLU, lane-dense store
    u = conv(xp2, slab2, Cout, w3_ref, z)
    o_ref[0] = jnp.maximum(u + z, 0.0)


def init_params(key, in_channels, out_channels, eps=1e-5):
    """Deterministic synthetic parameters matching the PyTorch module's shapes."""
    k1, k2, k3, k4, k5 = jax.random.split(key, 5)
    # PyTorch conv weights are (Cout, Cin, kH, kW); stored here as (kH, kW, Cin, Cout).
    w1 = jax.random.normal(k1, (3, 3, in_channels, out_channels), jnp.float32) * 0.1
    w2 = jax.random.normal(k2, (3, 3, out_channels, out_channels), jnp.float32) * 0.1
    w3 = jax.random.normal(k3, (3, 3, out_channels, out_channels), jnp.float32) * 0.1
    # BatchNorm2d params + running stats, folded to a per-channel scale/bias.
    gamma = 1.0 + 0.1 * jax.random.normal(k4, (out_channels,), jnp.float32)
    beta = 0.1 * jax.random.normal(k5, (out_channels,), jnp.float32)
    running_mean = jnp.zeros((out_channels,), jnp.float32)
    running_var = jnp.ones((out_channels,), jnp.float32)
    bn_scale = gamma * jax.lax.rsqrt(running_var + eps)
    bn_bias = beta - running_mean * bn_scale
    return dict(w1=w1, w2=w2, w3=w3, bn_scale=bn_scale, bn_bias=bn_bias)


@jax.jit
def face_progression_block(x_nchw, params):
    """faceProgressionBlock.forward.  x_nchw: (N, Cin, H, W) -> (N, Cout, H, W)."""
    N, Cin, H, W = x_nchw.shape
    Cout = params["w1"].shape[-1]

    # NCHW -> NHWC -> lane-dense (N, H, W*Cin)
    x = jnp.transpose(x_nchw, (0, 2, 3, 1)).reshape(N, H, W * Cin)

    # Fold the BN scale into w1 (wrapper-side, free); pack weights block-diag
    # over W so each conv is one lane-dense matmul in the kernel.
    w1_folded = params["w1"] * params["bn_scale"]
    w1_bd = _pack_blockdiag(w1_folded, W)                  # (9*W*Cin,  W*Cout)
    w2_bd = _pack_blockdiag(params["w2"], W)               # (9*W*Cout, W*Cout)
    w3_bd = _pack_blockdiag(params["w3"], W)               # (9*W*Cout, W*Cout)
    b1 = jnp.tile(params["bn_bias"], W).reshape(1, W * Cout)

    kernel = functools.partial(_fpb_kernel, H=H, W=W, Cin=Cin, Cout=Cout)

    out = pl.pallas_call(
        kernel,
        out_shape=jax.ShapeDtypeStruct((N, H, W * Cout), jnp.float32),
        grid_spec=pltpu.PrefetchScalarGridSpec(
            num_scalar_prefetch=0,
            grid=(N,),  # one grid step per image; weights stay VMEM-resident
            in_specs=[
                pl.BlockSpec((1, H, W * Cin), lambda n: (n, 0, 0)),
                pl.BlockSpec((9 * W * Cin, W * Cout), lambda n: (0, 0)),
                pl.BlockSpec((1, W * Cout), lambda n: (0, 0)),
                pl.BlockSpec((9 * W * Cout, W * Cout), lambda n: (0, 0)),
                pl.BlockSpec((9 * W * Cout, W * Cout), lambda n: (0, 0)),
            ],
            out_specs=pl.BlockSpec((1, H, W * Cout), lambda n: (n, 0, 0)),
            scratch_shapes=[
                pltpu.VMEM((H + 2, (W + 2) * Cin), jnp.float32),   # padded in
                pltpu.VMEM((H + 2, (W + 2) * Cout), jnp.float32),  # padded mid
                pltpu.VMEM((H, 9 * W * Cin), jnp.float32),         # tap slab 1
                pltpu.VMEM((H, 9 * W * Cout), jnp.float32),        # tap slab 2/3
            ],
        ),
        compiler_params=pltpu.CompilerParams(
            dimension_semantics=("parallel",),
            vmem_limit_bytes=32 * 1024 * 1024,
        ),
    )(x, w1_bd, b1, w2_bd, w3_bd)

    # (N, H, W*Cout) -> (N, H, W, Cout) -> NCHW
    return jnp.transpose(out.reshape(N, H, W, Cout), (0, 3, 1, 2))


def _reference(x_nchw, params):
    """Pure-JAX reference of the PyTorch module forward (eval-mode BN)."""
    x = jnp.transpose(x_nchw, (0, 2, 3, 1))

    def conv(a, w):
        return jax.lax.conv_general_dilated(
            a, w, window_strides=(1, 1), padding=((1, 1), (1, 1)),
            dimension_numbers=("NHWC", "HWIO", "NHWC"))

    y = conv(x, params["w1"]) * params["bn_scale"] + params["bn_bias"]
    y = jnp.maximum(y, 0.0)
    z = jnp.maximum(conv(y, params["w2"]) + y, 0.0)
    u = jnp.maximum(conv(z, params["w3"]) + z, 0.0)
    return jnp.transpose(u, (0, 3, 1, 2))


if __name__ == "__main__":
    key = jax.random.PRNGKey(0)
    kx, kp = jax.random.split(key)

    N, Cin, Cout, H, W = 2, 4, 8, 16, 16
    x = jax.random.normal(kx, (N, Cin, H, W), jnp.float32)
    params = init_params(kp, Cin, Cout)

    out = jax.block_until_ready(face_progression_block(x, params))

    assert out.shape == (N, Cout, H, W), out.shape
    assert out.dtype == jnp.float32
    assert bool(jnp.all(out >= 0.0))  # final ReLU

    ref = jax.block_until_ready(_reference(x, params))
    assert bool(jnp.allclose(out, ref, atol=1e-4, rtol=1e-4)), (
        float(jnp.max(jnp.abs(out - ref))))

    print("KERNEL_OK")
</pallas_src>

<mosaic_0001>
module attributes {stable_mosaic.version = 11 : i64} {
  func.func @_fpb_kernel(%arg0: i32, %arg1: memref<1x16x64xf32, #tpu.memory_space<vmem>>, %arg2: memref<576x128xf32, #tpu.memory_space<vmem>>, %arg3: memref<1x128xf32, #tpu.memory_space<vmem>>, %arg4: memref<1152x128xf32, #tpu.memory_space<vmem>>, %arg5: memref<1152x128xf32, #tpu.memory_space<vmem>>, %arg6: memref<1x16x128xf32, #tpu.memory_space<vmem>>, %arg7: memref<18x72xf32, #tpu.memory_space<vmem>>, %arg8: memref<18x144xf32, #tpu.memory_space<vmem>>, %arg9: memref<16x576xf32, #tpu.memory_space<vmem>>, %arg10: memref<16x1152xf32, #tpu.memory_space<vmem>>) attributes {dimension_semantics = [#tpu.dimension_semantics<parallel>], iteration_bounds = array<i64: 2>, scalar_prefetch = 0 : i64, scratch_operands = 4 : i64, tpu.core_type = #tpu.core_type<tc>, window_params = [{transform_indices = @transform_0, window_bounds = array<i64: 1, 16, 64>}, {pipeline_mode = #tpu.pipeline_mode<synchronous>, transform_indices = @transform_1, window_bounds = array<i64: 576, 128>}, {pipeline_mode = #tpu.pipeline_mode<synchronous>, transform_indices = @transform_2, window_bounds = array<i64: 1, 128>}, {pipeline_mode = #tpu.pipeline_mode<synchronous>, transform_indices = @transform_3, window_bounds = array<i64: 1152, 128>}, {pipeline_mode = #tpu.pipeline_mode<synchronous>, transform_indices = @transform_4, window_bounds = array<i64: 1152, 128>}, {transform_indices = @transform_5, window_bounds = array<i64: 1, 16, 128>}]} {
    %cst = arith.constant 0.000000e+00 : f32
    %0 = vector.broadcast %cst : f32 to vector<18x72xf32>
    %c0 = arith.constant 0 : index
    %c0_0 = arith.constant 0 : index
    %1 = vector.load %arg7[%c0, %c0_0] : memref<18x72xf32, #tpu.memory_space<vmem>>, vector<18x72xf32>
    tpu.vector_store %arg7[%c0, %c0_0], %0 {strides = array<i32>} : memref<18x72xf32, #tpu.memory_space<vmem>>, vector<18x72xf32>,
    %cst_1 = arith.constant 0.000000e+00 : f32
    %2 = vector.broadcast %cst_1 : f32 to vector<18x144xf32>
    %c0_2 = arith.constant 0 : index
    %c0_3 = arith.constant 0 : index
    %3 = vector.load %arg8[%c0_2, %c0_3] : memref<18x144xf32, #tpu.memory_space<vmem>>, vector<18x144xf32>
    tpu.vector_store %arg8[%c0_2, %c0_3], %2 {strides = array<i32>} : memref<18x144xf32, #tpu.memory_space<vmem>>, vector<18x144xf32>,
    %c0_4 = arith.constant 0 : index
    %c0_5 = arith.constant 0 : index
    %c0_6 = arith.constant 0 : index
    %4 = vector.load %arg1[%c0_4, %c0_5, %c0_6] : memref<1x16x64xf32, #tpu.memory_space<vmem>>, vector<1x16x64xf32>
    %5 = vector.shape_cast %4 : vector<1x16x64xf32> to vector<16x64xf32>
    %c1 = arith.constant 1 : index
    %c4 = arith.constant 4 : index
    %6 = vector.load %arg7[%c1, %c4] : memref<18x72xf32, #tpu.memory_space<vmem>>, vector<16x64xf32>
    tpu.vector_store %arg7[%c1, %c4], %5 {strides = array<i32>} : memref<18x72xf32, #tpu.memory_space<vmem>>, vector<16x64xf32>,
    %c0_7 = arith.constant 0 : index
    %c0_8 = arith.constant 0 : index
    %7 = vector.load %arg7[%c0_7, %c0_8] : memref<18x72xf32, #tpu.memory_space<vmem>>, vector<16x64xf32>
    %c0_9 = arith.constant 0 : index
    %c0_10 = arith.constant 0 : index
    %8 = vector.load %arg9[%c0_9, %c0_10] : memref<16x576xf32, #tpu.memory_space<vmem>>, vector<16x64xf32>
    tpu.vector_store %arg9[%c0_9, %c0_10], %7 {strides = array<i32>} : memref<16x576xf32, #tpu.memory_space<vmem>>, vector<16x64xf32>,
    %c0_11 = arith.constant 0 : index
    %c4_12 = arith.constant 4 : index
    %9 = vector.load %arg7[%c0_11, %c4_12] : memref<18x72xf32, #tpu.memory_space<vmem>>, vector<16x64xf32>
    %c0_13 = arith.constant 0 : index
    %c64 = arith.constant 64 : index
    %10 = vector.load %arg9[%c0_13, %c64] : memref<16x576xf32, #tpu.memory_space<vmem>>, vector<16x64xf32>
    tpu.vector_store %arg9[%c0_13, %c64], %9 {strides = array<i32>} : memref<16x576xf32, #tpu.memory_space<vmem>>, vector<16x64xf32>,
    %c0_14 = arith.constant 0 : index
    %c8 = arith.constant 8 : index
    %11 = vector.load %arg7[%c0_14, %c8] : memref<18x72xf32, #tpu.memory_space<vmem>>, vector<16x64xf32>
    %c0_15 = arith.constant 0 : index
    %c128 = arith.constant 128 : index
    %12 = vector.load %arg9[%c0_15, %c128] : memref<16x576xf32, #tpu.memory_space<vmem>>, vector<16x64xf32>
    tpu.vector_store %arg9[%c0_15, %c128], %11 {strides = array<i32>} : memref<16x576xf32, #tpu.memory_space<vmem>>, vector<16x64xf32>,
    %c1_16 = arith.constant 1 : index
    %c0_17 = arith.constant 0 : index
    %13 = vector.load %arg7[%c1_16, %c0_17] : memref<18x72xf32, #tpu.memory_space<vmem>>, vector<16x64xf32>
    %c0_18 = arith.constant 0 : index
    %c192 = arith.constant 192 : index
    %14 = vector.load %arg9[%c0_18, %c192] : memref<16x576xf32, #tpu.memory_space<vmem>>, vector<16x64xf32>
    tpu.vector_store %arg9[%c0_18, %c192], %13 {strides = array<i32>} : memref<16x576xf32, #tpu.memory_space<vmem>>, vector<16x64xf32>,
    %c1_19 = arith.constant 1 : index
    %c4_20 = arith.constant 4 : index
    %15 = vector.load %arg7[%c1_19, %c4_20] : memref<18x72xf32, #tpu.memory_space<vmem>>, vector<16x64xf32>
    %c0_21 = arith.constant 0 : index
    %c256 = arith.constant 256 : index
    %16 = vector.load %arg9[%c0_21, %c256] : memref<16x576xf32, #tpu.memory_space<vmem>>, vector<16x64xf32>
    tpu.vector_store %arg9[%c0_21, %c256], %15 {strides = array<i32>} : memref<16x576xf32, #tpu.memory_space<vmem>>, vector<16x64xf32>,
    %c1_22 = arith.constant 1 : index
    %c8_23 = arith.constant 8 : index
    %17 = vector.load %arg7[%c1_22, %c8_23] : memref<18x72xf32, #tpu.memory_space<vmem>>, vector<16x64xf32>
    %c0_24 = arith.constant 0 : index
    %c320 = arith.constant 320 : index
    %18 = vector.load %arg9[%c0_24, %c320] : memref<16x576xf32, #tpu.memory_space<vmem>>, vector<16x64xf32>
    tpu.vector_store %arg9[%c0_24, %c320], %17 {strides = array<i32>} : memref<16x576xf32, #tpu.memory_space<vmem>>, vector<16x64xf32>,
    %c2 = arith.constant 2 : index
    %c0_25 = arith.constant 0 : index
    %19 = vector.load %arg7[%c2, %c0_25] : memref<18x72xf32, #tpu.memory_space<vmem>>, vector<16x64xf32>
    %c0_26 = arith.constant 0 : index
    %c384 = arith.constant 384 : index
    %20 = vector.load %arg9[%c0_26, %c384] : memref<16x576xf32, #tpu.memory_space<vmem>>, vector<16x64xf32>
    tpu.vector_store %arg9[%c0_26, %c384], %19 {strides = array<i32>} : memref<16x576xf32, #tpu.memory_space<vmem>>, vector<16x64xf32>,
    %c2_27 = arith.constant 2 : index
    %c4_28 = arith.constant 4 : index
    %21 = vector.load %arg7[%c2_27, %c4_28] : memref<18x72xf32, #tpu.memory_space<vmem>>, vector<16x64xf32>
    %c0_29 = arith.constant 0 : index
    %c448 = arith.constant 448 : index
    %22 = vector.load %arg9[%c0_29, %c448] : memref<16x576xf32, #tpu.memory_space<vmem>>, vector<16x64xf32>
    tpu.vector_store %arg9[%c0_29, %c448], %21 {strides = array<i32>} : memref<16x576xf32, #tpu.memory_space<vmem>>, vector<16x64xf32>,
    %c2_30 = arith.constant 2 : index
    %c8_31 = arith.constant 8 : index
    %23 = vector.load %arg7[%c2_30, %c8_31] : memref<18x72xf32, #tpu.memory_space<vmem>>, vector<16x64xf32>
    %c0_32 = arith.constant 0 : index
    %c512 = arith.constant 512 : index
    %24 = vector.load %arg9[%c0_32, %c512] : memref<16x576xf32, #tpu.memory_space<vmem>>, vector<16x64xf32>
    tpu.vector_store %arg9[%c0_32, %c512], %23 {strides = array<i32>} : memref<16x576xf32, #tpu.memory_space<vmem>>, vector<16x64xf32>,
    %c0_33 = arith.constant 0 : index
    %c0_34 = arith.constant 0 : index
    %25 = vector.load %arg9[%c0_33, %c0_34] : memref<16x576xf32, #tpu.memory_space<vmem>>, vector<16x576xf32>
    %c0_35 = arith.constant 0 : index
    %c0_36 = arith.constant 0 : index
    %26 = vector.load %arg2[%c0_35, %c0_36] : memref<576x128xf32, #tpu.memory_space<vmem>>, vector<576x128xf32>
    %cst_37 = arith.constant dense<0.000000e+00> : vector<16x128xf32>
    %27 = tpu.matmul %25, %26, %cst_37 {dimension_numbers = #tpu.dot_dimension_numbers<[1], [0], [0], [1], [0, 0, 1, 1], [], []>} : vector<16x576xf32>, vector<576x128xf32>, vector<16x128xf32> -> vector<16x128xf32>
    %c0_38 = arith.constant 0 : index
    %c0_39 = arith.constant 0 : index
    %28 = vector.load %arg3[%c0_38, %c0_39] : memref<1x128xf32, #tpu.memory_space<vmem>>, vector<1x128xf32>
    %29 = vector.broadcast %28 : vector<1x128xf32> to vector<16x128xf32>
    %30 = arith.addf %27, %29 : vector<16x128xf32>
    %cst_40 = arith.constant 0.000000e+00 : f32
    %31 = vector.broadcast %cst_40 : f32 to vector<16x128xf32>
    %32 = arith.maximumf %30, %31 : vector<16x128xf32>
    %c1_41 = arith.constant 1 : index
    %c8_42 = arith.constant 8 : index
    %33 = vector.load %arg8[%c1_41, %c8_42] : memref<18x144xf32, #tpu.memory_space<vmem>>, vector<16x128xf32>
    tpu.vector_store %arg8[%c1_41, %c8_42], %32 {strides = array<i32>} : memref<18x144xf32, #tpu.memory_space<vmem>>, vector<16x128xf32>,
    %c0_43 = arith.constant 0 : index
    %c0_44 = arith.constant 0 : index
    %34 = vector.load %arg8[%c0_43, %c0_44] : memref<18x144xf32, #tpu.memory_space<vmem>>, vector<16x128xf32>
    %c0_45 = arith.constant 0 : index
    %c0_46 = arith.constant 0 : index
    %35 = vector.load %arg10[%c0_45, %c0_46] : memref<16x1152xf32, #tpu.memory_space<vmem>>, vector<16x128xf32>
    tpu.vector_store %arg10[%c0_45, %c0_46], %34 {strides = array<i32>} : memref<16x1152xf32, #tpu.memory_space<vmem>>, vector<16x128xf32>,
    %c0_47 = arith.constant 0 : index
    %c8_48 = arith.constant 8 : index
    %36 = vector.load %arg8[%c0_47, %c8_48] : memref<18x144xf32, #tpu.memory_space<vmem>>, vector<16x128xf32>
    %c0_49 = arith.constant 0 : index
    %c128_50 = arith.constant 128 : index
    %37 = vector.load %arg10[%c0_49, %c128_50] : memref<16x1152xf32, #tpu.memory_space<vmem>>, vector<16x128xf32>
    tpu.vector_store %arg10[%c0_49, %c128_50], %36 {strides = array<i32>} : memref<16x1152xf32, #tpu.memory_space<vmem>>, vector<16x128xf32>,
    %c0_51 = arith.constant 0 : index
    %c16 = arith.constant 16 : index
    %38 = vector.load %arg8[%c0_51, %c16] : memref<18x144xf32, #tpu.memory_space<vmem>>, vector<16x128xf32>
    %c0_52 = arith.constant 0 : index
    %c256_53 = arith.constant 256 : index
    %39 = vector.load %arg10[%c0_52, %c256_53] : memref<16x1152xf32, #tpu.memory_space<vmem>>, vector<16x128xf32>
    tpu.vector_store %arg10[%c0_52, %c256_53], %38 {strides = array<i32>} : memref<16x1152xf32, #tpu.memory_space<vmem>>, vector<16x128xf32>,
    %c1_54 = arith.constant 1 : index
    %c0_55 = arith.constant 0 : index
    %40 = vector.load %arg8[%c1_54, %c0_55] : memref<18x144xf32, #tpu.memory_space<vmem>>, vector<16x128xf32>
    %c0_56 = arith.constant 0 : index
    %c384_57 = arith.constant 384 : index
    %41 = vector.load %arg10[%c0_56, %c384_57] : memref<16x1152xf32, #tpu.memory_space<vmem>>, vector<16x128xf32>
    tpu.vector_store %arg10[%c0_56, %c384_57], %40 {strides = array<i32>} : memref<16x1152xf32, #tpu.memory_space<vmem>>, vector<16x128xf32>,
    %c1_58 = arith.constant 1 : index
    %c8_59 = arith.constant 8 : index
    %42 = vector.load %arg8[%c1_58, %c8_59] : memref<18x144xf32, #tpu.memory_space<vmem>>, vector<16x128xf32>
    %c0_60 = arith.constant 0 : index
    %c512_61 = arith.constant 512 : index
    %43 = vector.load %arg10[%c0_60, %c512_61] : memref<16x1152xf32, #tpu.memory_space<vmem>>, vector<16x128xf32>
    tpu.vector_store %arg10[%c0_60, %c512_61], %42 {strides = array<i32>} : memref<16x1152xf32, #tpu.memory_space<vmem>>, vector<16x128xf32>,
    %c1_62 = arith.constant 1 : index
    %c16_63 = arith.constant 16 : index
    %44 = vector.load %arg8[%c1_62, %c16_63] : memref<18x144xf32, #tpu.memory_space<vmem>>, vector<16x128xf32>
    %c0_64 = arith.constant 0 : index
    %c640 = arith.constant 640 : index
    %45 = vector.load %arg10[%c0_64, %c640] : memref<16x1152xf32, #tpu.memory_space<vmem>>, vector<16x128xf32>
    tpu.vector_store %arg10[%c0_64, %c640], %44 {strides = array<i32>} : memref<16x1152xf32, #tpu.memory_space<vmem>>, vector<16x128xf32>,
    %c2_65 = arith.constant 2 : index
    %c0_66 = arith.constant 0 : index
    %46 = vector.load %arg8[%c2_65, %c0_66] : memref<18x144xf32, #tpu.memory_space<vmem>>, vector<16x128xf32>
    %c0_67 = arith.constant 0 : index
    %c768 = arith.constant 768 : index
    %47 = vector.load %arg10[%c0_67, %c768] : memref<16x1152xf32, #tpu.memory_space<vmem>>, vector<16x128xf32>
    tpu.vector_store %arg10[%c0_67, %c768], %46 {strides = array<i32>} : memref<16x1152xf32, #tpu.memory_space<vmem>>, vector<16x128xf32>,
    %c2_68 = arith.constant 2 : index
    %c8_69 = arith.constant 8 : index
    %48 = vector.load %arg8[%c2_68, %c8_69] : memref<18x144xf32, #tpu.memory_space<vmem>>, vector<16x128xf32>
    %c0_70 = arith.constant 0 : index
    %c896 = arith.constant 896 : index
    %49 = vector.load %arg10[%c0_70, %c896] : memref<16x1152xf32, #tpu.memory_space<vmem>>, vector<16x128xf32>
    tpu.vector_store %arg10[%c0_70, %c896], %48 {strides = array<i32>} : memref<16x1152xf32, #tpu.memory_space<vmem>>, vector<16x128xf32>,
    %c2_71 = arith.constant 2 : index
    %c16_72 = arith.constant 16 : index
    %50 = vector.load %arg8[%c2_71, %c16_72] : memref<18x144xf32, #tpu.memory_space<vmem>>, vector<16x128xf32>
    %c0_73 = arith.constant 0 : index
    %c1024 = arith.constant 1024 : index
    %51 = vector.load %arg10[%c0_73, %c1024] : memref<16x1152xf32, #tpu.memory_space<vmem>>, vector<16x128xf32>
    tpu.vector_store %arg10[%c0_73, %c1024], %50 {strides = array<i32>} : memref<16x1152xf32, #tpu.memory_space<vmem>>, vector<16x128xf32>,
    %c0_74 = arith.constant 0 : index
    %c0_75 = arith.constant 0 : index
    %52 = vector.load %arg10[%c0_74, %c0_75] : memref<16x1152xf32, #tpu.memory_space<vmem>>, vector<16x1152xf32>
    %c0_76 = arith.constant 0 : index
    %c0_77 = arith.constant 0 : index
    %53 = vector.load %arg4[%c0_76, %c0_77] : memref<1152x128xf32, #tpu.memory_space<vmem>>, vector<1152x128xf32>
    %cst_78 = arith.constant dense<0.000000e+00> : vector<16x128xf32>
    %54 = tpu.matmul %52, %53, %cst_78 {dimension_numbers = #tpu.dot_dimension_numbers<[1], [0], [0], [1], [0, 0, 1, 1], [], []>} : vector<16x1152xf32>, vector<1152x128xf32>, vector<16x128xf32> -> vector<16x128xf32>
    %55 = arith.addf %54, %32 : vector<16x128xf32>
    %cst_79 = arith.constant 0.000000e+00 : f32
    %56 = vector.broadcast %cst_79 : f32 to vector<16x128xf32>
    %57 = arith.maximumf %55, %56 : vector<16x128xf32>
    %c1_80 = arith.constant 1 : index
    %c8_81 = arith.constant 8 : index
    %58 = vector.load %arg8[%c1_80, %c8_81] : memref<18x144xf32, #tpu.memory_space<vmem>>, vector<16x128xf32>
    tpu.vector_store %arg8[%c1_80, %c8_81], %57 {strides = array<i32>} : memref<18x144xf32, #tpu.memory_space<vmem>>, vector<16x128xf32>,
    %c0_82 = arith.constant 0 : index
    %c0_83 = arith.constant 0 : index
    %59 = vector.load %arg8[%c0_82, %c0_83] : memref<18x144xf32, #tpu.memory_space<vmem>>, vector<16x128xf32>
    %c0_84 = arith.constant 0 : index
    %c0_85 = arith.constant 0 : index
    %60 = vector.load %arg10[%c0_84, %c0_85] : memref<16x1152xf32, #tpu.memory_space<vmem>>, vector<16x128xf32>
    tpu.vector_store %arg10[%c0_84, %c0_85], %59 {strides = array<i32>} : memref<16x1152xf32, #tpu.memory_space<vmem>>, vector<16x128xf32>,
    %c0_86 = arith.constant 0 : index
    %c8_87 = arith.constant 8 : index
    %61 = vector.load %arg8[%c0_86, %c8_87] : memref<18x144xf32, #tpu.memory_space<vmem>>, vector<16x128xf32>
    %c0_88 = arith.constant 0 : index
    %c128_89 = arith.constant 128 : index
    %62 = vector.load %arg10[%c0_88, %c128_89] : memref<16x1152xf32, #tpu.memory_space<vmem>>, vector<16x128xf32>
    tpu.vector_store %arg10[%c0_88, %c128_89], %61 {strides = array<i32>} : memref<16x1152xf32, #tpu.memory_space<vmem>>, vector<16x128xf32>,
    %c0_90 = arith.constant 0 : index
    %c16_91 = arith.constant 16 : index
    %63 = vector.load %arg8[%c0_90, %c16_91] : memref<18x144xf32, #tpu.memory_space<vmem>>, vector<16x128xf32>
    %c0_92 = arith.constant 0 : index
    %c256_93 = arith.constant 256 : index
    %64 = vector.load %arg10[%c0_92, %c256_93] : memref<16x1152xf32, #tpu.memory_space<vmem>>, vector<16x128xf32>
    tpu.vector_store %arg10[%c0_92, %c256_93], %63 {strides = array<i32>} : memref<16x1152xf32, #tpu.memory_space<vmem>>, vector<16x128xf32>,
    %c1_94 = arith.constant 1 : index
    %c0_95 = arith.constant 0 : index
    %65 = vector.load %arg8[%c1_94, %c0_95] : memref<18x144xf32, #tpu.memory_space<vmem>>, vector<16x128xf32>
    %c0_96 = arith.constant 0 : index
    %c384_97 = arith.constant 384 : index
    %66 = vector.load %arg10[%c0_96, %c384_97] : memref<16x1152xf32, #tpu.memory_space<vmem>>, vector<16x128xf32>
    tpu.vector_store %arg10[%c0_96, %c384_97], %65 {strides = array<i32>} : memref<16x1152xf32, #tpu.memory_space<vmem>>, vector<16x128xf32>,
    %c1_98 = arith.constant 1 : index
    %c8_99 = arith.constant 8 : index
    %67 = vector.load %arg8[%c1_98, %c8_99] : memref<18x144xf32, #tpu.memory_space<vmem>>, vector<16x128xf32>
    %c0_100 = arith.constant 0 : index
    %c512_101 = arith.constant 512 : index
    %68 = vector.load %arg10[%c0_100, %c512_101] : memref<16x1152xf32, #tpu.memory_space<vmem>>, vector<16x128xf32>
    tpu.vector_store %arg10[%c0_100, %c512_101], %67 {strides = array<i32>} : memref<16x1152xf32, #tpu.memory_space<vmem>>, vector<16x128xf32>,
    %c1_102 = arith.constant 1 : index
    %c16_103 = arith.constant 16 : index
    %69 = vector.load %arg8[%c1_102, %c16_103] : memref<18x144xf32, #tpu.memory_space<vmem>>, vector<16x128xf32>
    %c0_104 = arith.constant 0 : index
    %c640_105 = arith.constant 640 : index
    %70 = vector.load %arg10[%c0_104, %c640_105] : memref<16x1152xf32, #tpu.memory_space<vmem>>, vector<16x128xf32>
    tpu.vector_store %arg10[%c0_104, %c640_105], %69 {strides = array<i32>} : memref<16x1152xf32, #tpu.memory_space<vmem>>, vector<16x128xf32>,
    %c2_106 = arith.constant 2 : index
    %c0_107 = arith.constant 0 : index
    %71 = vector.load %arg8[%c2_106, %c0_107] : memref<18x144xf32, #tpu.memory_space<vmem>>, vector<16x128xf32>
    %c0_108 = arith.constant 0 : index
    %c768_109 = arith.constant 768 : index
    %72 = vector.load %arg10[%c0_108, %c768_109] : memref<16x1152xf32, #tpu.memory_space<vmem>>, vector<16x128xf32>
    tpu.vector_store %arg10[%c0_108, %c768_109], %71 {strides = array<i32>} : memref<16x1152xf32, #tpu.memory_space<vmem>>, vector<16x128xf32>,
    %c2_110 = arith.constant 2 : index
    %c8_111 = arith.constant 8 : index
    %73 = vector.load %arg8[%c2_110, %c8_111] : memref<18x144xf32, #tpu.memory_space<vmem>>, vector<16x128xf32>
    %c0_112 = arith.constant 0 : index
    %c896_113 = arith.constant 896 : index
    %74 = vector.load %arg10[%c0_112, %c896_113] : memref<16x1152xf32, #tpu.memory_space<vmem>>, vector<16x128xf32>
    tpu.vector_store %arg10[%c0_112, %c896_113], %73 {strides = array<i32>} : memref<16x1152xf32, #tpu.memory_space<vmem>>, vector<16x128xf32>,
    %c2_114 = arith.constant 2 : index
    %c16_115 = arith.constant 16 : index
    %75 = vector.load %arg8[%c2_114, %c16_115] : memref<18x144xf32, #tpu.memory_space<vmem>>, vector<16x128xf32>
    %c0_116 = arith.constant 0 : index
    %c1024_117 = arith.constant 1024 : index
    %76 = vector.load %arg10[%c0_116, %c1024_117] : memref<16x1152xf32, #tpu.memory_space<vmem>>, vector<16x128xf32>
    tpu.vector_store %arg10[%c0_116, %c1024_117], %75 {strides = array<i32>} : memref<16x1152xf32, #tpu.memory_space<vmem>>, vector<16x128xf32>,
    %c0_118 = arith.constant 0 : index
    %c0_119 = arith.constant 0 : index
    %77 = vector.load %arg10[%c0_118, %c0_119] : memref<16x1152xf32, #tpu.memory_space<vmem>>, vector<16x1152xf32>
    %c0_120 = arith.constant 0 : index
    %c0_121 = arith.constant 0 : index
    %78 = vector.load %arg5[%c0_120, %c0_121] : memref<1152x128xf32, #tpu.memory_space<vmem>>, vector<1152x128xf32>
    %cst_122 = arith.constant dense<0.000000e+00> : vector<16x128xf32>
    %79 = tpu.matmul %77, %78, %cst_122 {dimension_numbers = #tpu.dot_dimension_numbers<[1], [0], [0], [1], [0, 0, 1, 1], [], []>} : vector<16x1152xf32>, vector<1152x128xf32>, vector<16x128xf32> -> vector<16x128xf32>
    %80 = arith.addf %79, %57 : vector<16x128xf32>
    %cst_123 = arith.constant 0.000000e+00 : f32
    %81 = vector.broadcast %cst_123 : f32 to vector<16x128xf32>
    %82 = arith.maximumf %80, %81 : vector<16x128xf32>
    %c0_124 = arith.constant 0 : index
    %c0_125 = arith.constant 0 : index
    %c0_126 = arith.constant 0 : index
    %83 = vector.load %arg6[%c0_124, %c0_125, %c0_126] : memref<1x16x128xf32, #tpu.memory_space<vmem>>, vector<1x16x128xf32>
    %84 = vector.shape_cast %83 : vector<1x16x128xf32> to vector<16x128xf32>
    %85 = vector.shape_cast %82 : vector<16x128xf32> to vector<1x16x128xf32>
    tpu.vector_store %arg6[%c0_124, %c0_125, %c0_126], %85 {strides = array<i32>} : memref<1x16x128xf32, #tpu.memory_space<vmem>>, vector<1x16x128xf32>,
    return
  }
  func.func @transform_0(%arg0: i32) -> (i32, i32, i32) {
    %c0_i32 = arith.constant 0 : i32
    %c0_i32_0 = arith.constant 0 : i32
    %c0_i32_1 = arith.constant 0 : i32
    return %arg0, %c0_i32, %c0_i32_0 : i32, i32, i32
  }
  func.func @transform_1(%arg0: i32) -> (i32, i32) {
    %c0_i32 = arith.constant 0 : i32
    %c0_i32_0 = arith.constant 0 : i32
    %c0_i32_1 = arith.constant 0 : i32
    return %c0_i32, %c0_i32_0 : i32, i32
  }
  func.func @transform_2(%arg0: i32) -> (i32, i32) {
    %c0_i32 = arith.constant 0 : i32
    %c0_i32_0 = arith.constant 0 : i32
    %c0_i32_1 = arith.constant 0 : i32
    return %c0_i32, %c0_i32_0 : i32, i32
  }
  func.func @transform_3(%arg0: i32) -> (i32, i32) {
    %c0_i32 = arith.constant 0 : i32
    %c0_i32_0 = arith.constant 0 : i32
    %c0_i32_1 = arith.constant 0 : i32
    return %c0_i32, %c0_i32_0 : i32, i32
  }
  func.func @transform_4(%arg0: i32) -> (i32, i32) {
    %c0_i32 = arith.constant 0 : i32
    %c0_i32_0 = arith.constant 0 : i32
    %c0_i32_1 = arith.constant 0 : i32
    return %c0_i32, %c0_i32_0 : i32, i32
  }
  func.func @transform_5(%arg0: i32) -> (i32, i32, i32) {
    %c0_i32 = arith.constant 0 : i32
    %c0_i32_0 = arith.constant 0 : i32
    %c0_i32_1 = arith.constant 0 : i32
    return %arg0, %c0_i32, %c0_i32_0 : i32, i32, i32
  }
}

</mosaic_0001>

<bundles_post_ra>
// kernel: tile.8
= control target key start
LH: loop header
LB: loop body
LE: loop exit
PB: predicated region body
PF: predicated region fallthrough
CT: control target
= control target key end

     0   :  { %s28_s0 = inlined_call_operand.vmem [shape: f32[8], index: 0, kind: input, shape index: {}]   ;;  %s29_s1 = inlined_call_operand.vmem [shape: f32[16,8], index: 1, kind: output, shape index: {}]  }
   0x1   :  { %v4_v0 = vld [vmem:[%s28_s0] ss:$0 sm:$0xff] }
   0x2   :  { %5 = vst [vmem:[%s29_s1] sm:$0xff] %v4_v0  ;;  %8 = vst [vmem:[%s29_s1 + $0x8] sm:$0xff] %v4_v0 }

// kernel: tile.9
= control target key start
LH: loop header
LB: loop body
LE: loop exit
PB: predicated region body
PF: predicated region fallthrough
CT: control target
= control target key end

     0   :  { %s131_s10 = smov 120   ;;  %s132_s11 = smov 104   ;;  %vm3_vm0 = vcmask 64512   ;;  %vm9_vm1 = vcmask 1048512   ;;  %vm15_vm2 = vcmask 982912   ;;  %vm21_vm3 = vcmask 917312   ;;  %s207_s0 = inlined_call_operand.vmem [shape: f32[16,8], index: 0, kind: input, shape index: {}]   ;;  %s208_s1 = inlined_call_operand.vmem [shape: f32[1,128], index: 1, kind: output, shape index: {}]  }
   0x1   :  { %v101_v0 = vld [vmem:[%s207_s0 + $0xf] sm:$0x1]   ;;  %v103_v1 = vld [vmem:[%s207_s0 + $0xd] sm:$0x1]   ;;  %v102_v2 = vld [vmem:[%s207_s0 + $0xe] sm:$0x1]  }
   0x2   :  { %7 = vrot.lane.b32.xlu0 %v101_v0, %s131_s10  ;;  %19 = vrot.lane.b32.xlu1 %v103_v1, %s132_s11  ;;  %v104_v3 = vld [vmem:[%s207_s0 + $0xc] sm:$0x1]   ;;  %s133_s16 = smov 112   ;;  %s134_s17 = smov 96   ;;  %v105_v4 = vld [vmem:[%s207_s0 + $0xb] sm:$0x1]  }
   0x3   :  { %v106_v5 = vld [vmem:[%s207_s0 + $0xa] sm:$0x1]   ;;  %v2_v6 = vld [vmem:[%s207_s0] sm:$0x1]   ;;  %s135_s24 = smov 88   ;;  %s136_s25 = smov 80  }
   0x4   :  { %4 = vst.msk [vmem:[#allocation0] sm:$0x1] %vm3_vm0, %v2_v6   ;;  %v107_v7 = vld [vmem:[%s207_s0 + $0x9] sm:$0x1]   ;;  %v108_v8 = vld [vmem:[%s207_s0 + $0x8] sm:$0x1]  }
   0x5   :  { %s137_s30 = smov 72   ;;  %s138_s2 = smov 64   ;;  %v109_v9 = vld [vmem:[%s207_s0 + $0x7] sm:$0x1]   ;;  %v110_v10 = vld [vmem:[%s207_s0 + $0x6] sm:$0x1]  }
   0x6   :  { %13 = vrot.lane.b32.xlu0 %v102_v2, %s133_s16  ;;  %25 = vrot.lane.b32.xlu1 %v104_v3, %s134_s17  ;;  %s139_s7 = smov 56   ;;  %s140_s8 = smov 48   ;;  %v111_v11 = vld [vmem:[%s207_s0 + $0x5] sm:$0x1]   ;;  %v112_v12 = vld [vmem:[%s207_s0 + $0x4] sm:$0x1]  }
   0x7   :  { %s141_s13 = smov 40   ;;  %s142_s14 = smov 32   ;;  %v113_v13 = vld [vmem:[%s207_s0 + $0x3] sm:$0x1]   ;;  %v114_v14 = vld [vmem:[%s207_s0 + $0x2] sm:$0x1]  }
   0x8   :  { %s143_s19 = smov 24   ;;  %s144_s20 = smov 16   ;;  %v115_v15 = vld [vmem:[%s207_s0 + $0x1] sm:$0x1]   ;;  %vm27_vm4 = vcmask 851712   ;;  %vm33_vm5 = vcmask 786112  }
   0x9   :  { %s145_s0 = smov 8   ;;  %vm39_vm6 = vcmask 720512   ;;  %vm45_vm7 = vcmask 654912   ;;  %vm51_vm8 = vcmask 589312   ;;  %vm57_vm9 = vcmask 523712  }
   0xa   :  { %31 = vrot.lane.b32.xlu0 %v105_v4, %s135_s24  ;;  %37 = vrot.lane.b32.xlu1 %v106_v5, %s136_s25  ;;  %vm63_vm10 = vcmask 458112   ;;  %vm69_vm11 = vcmask 392512   ;;  %vm75_vm12 = vcmask 326912   ;;  %vm81_vm13 = vcmask 261312  }
   0xb   :  { %vm87_vm14 = vcmask 195712   ;;  %vm93_vm15 = vcmask 130112  }
   0xe   :  { %43 = vrot.lane.b32.xlu0 %v107_v7, %s137_s30  ;;  %49 = vrot.lane.b32.xlu1 %v108_v8, %s138_s2 }
  0x12   :  { %55 = vrot.lane.b32.xlu0 %v109_v9, %s139_s7  ;;  %61 = vrot.lane.b32.xlu1 %v110_v10, %s140_s8 }
  0x16   :  { %67 = vrot.lane.b32.xlu0 %v111_v11, %s141_s13  ;;  %73 = vrot.lane.b32.xlu1 %v112_v12, %s142_s14 }
  0x1a   :  { %79 = vrot.lane.b32.xlu0 %v113_v13, %s143_s19  ;;  %85 = vrot.lane.b32.xlu1 %v114_v14, %s144_s20 }
  0x1e   :  { %91 = vrot.lane.b32.xlu0 %v115_v15, %s145_s0 }
  0x74   :  { %v8_v16 = vpop.permute.xlu0 %7   ;;  %v20_v17 = vpop.permute.xlu1 %19  }
  0x75   :  { %10 = vst.msk [vmem:[#allocation0] sm:$0x1] %vm9_vm1, %v8_v16  }
  0x78   :  { %v14_v18 = vpop.permute.xlu0 %13   ;;  %v26_v19 = vpop.permute.xlu1 %25  }
  0x79   :  { %16 = vst.msk [vmem:[#allocation0] sm:$0x1] %vm15_vm2, %v14_v18  }
  0x7a   :  { %22 = vst.msk [vmem:[#allocation0] sm:$0x1] %vm21_vm3, %v20_v17  }
  0x7b   :  { %28 = vst.msk [vmem:[#allocation0] sm:$0x1] %vm27_vm4, %v26_v19  }
  0x7c   :  { %v32_v20 = vpop.permute.xlu0 %31   ;;  %v38_v21 = vpop.permute.xlu1 %37  }
  0x7d   :  { %34 = vst.msk [vmem:[#allocation0] sm:$0x1] %vm33_vm5, %v32_v20  }
  0x7e   :  { %40 = vst.msk [vmem:[#allocation0] sm:$0x1] %vm39_vm6, %v38_v21  }
  0x80   :  { %v44_v22 = vpop.permute.xlu0 %43   ;;  %v50_v23 = vpop.permute.xlu1 %49  }
  0x81   :  { %46 = vst.msk [vmem:[#allocation0] sm:$0x1] %vm45_vm7, %v44_v22  }
  0x82   :  { %52 = vst.msk [vmem:[#allocation0] sm:$0x1] %vm51_vm8, %v50_v23  }
  0x84   :  { %v56_v24 = vpop.permute.xlu0 %55   ;;  %v62_v25 = vpop.permute.xlu1 %61  }
  0x85   :  { %58 = vst.msk [vmem:[#allocation0] sm:$0x1] %vm57_vm9, %v56_v24  }
  0x86   :  { %64 = vst.msk [vmem:[#allocation0] sm:$0x1] %vm63_vm10, %v62_v25  }
  0x88   :  { %v68_v26 = vpop.permute.xlu0 %67   ;;  %v74_v27 = vpop.permute.xlu1 %73  }
  0x89   :  { %70 = vst.msk [vmem:[#allocation0] sm:$0x1] %vm69_vm11, %v68_v26  }
  0x8a   :  { %76 = vst.msk [vmem:[#allocation0] sm:$0x1] %vm75_vm12, %v74_v27  }
  0x8c   :  { %v80_v28 = vpop.permute.xlu0 %79   ;;  %v86_v29 = vpop.permute.xlu1 %85  }
  0x8d   :  { %82 = vst.msk [vmem:[#allocation0] sm:$0x1] %vm81_vm13, %v80_v28  }
  0x8e   :  { %88 = vst.msk [vmem:[#allocation0] sm:$0x1] %vm87_vm14, %v86_v29  }
  0x90   :  { %v92_v30 = vpop.permute.xlu0 %91  }
  0x91   :  { %94 = vst.msk [vmem:[#allocation0] sm:$0x1] %vm93_vm15, %v92_v30  }
  0x98   :  { %v98_v31 = vld [vmem:[#allocation0] sm:$0x1] }
  0x99   :  { %100 = vst [vmem:[%s208_s1] sm:$0x1] %v98_v31 }

// kernel: face_progression_block.1
= control target key start
LH: loop header
LB: loop body
LE: loop exit
PB: predicated region body
PF: predicated region fallthrough
CT: control target
= control target key end

     0   :  { %s3412_s18 = smov 0   ;;  %s4758_s0 = inlined_call_operand.vmem [shape: f32[2,16,64], index: 0, kind: input, shape index: {}]   ;;  %s4759_s1 = inlined_call_operand.vmem [shape: f32[576,128], index: 1, kind: input, shape index: {}]   ;;  %s4760_s2 = inlined_call_operand.vmem [shape: f32[1,128], index: 2, kind: input, shape index: {}]   ;;  %s4761_s3 = inlined_call_operand.vmem [shape: f32[1152,128], index: 3, kind: input, shape index: {}]   ;;  %s4762_s4 = inlined_call_operand.vmem [shape: f32[1152,128], index: 4, kind: input, shape index: {}]   ;;  %s4763_s5 = inlined_call_operand.vmem [shape: f32[2,16,128], index: 5, kind: output, shape index: {}]  }
   0x1 LB: > { %s2297_s19 = sadd.s32 4294967295, %s3371_s18   ;;  %p2301_p0 = scmp.ge.s32.totalorder %s3371_s18, 1  ;;  %s3371_s18 = sphi %s3412_s18, %s15_s18  }
   0x2   : > { %p187_p1 = scmp.lt.s32.totalorder %s3371_s18, 3 }
   0x4   : > { %p188_p2 = pnand %p2301_p0, %p187_p1 }
   0x5   : > { %p215_p3 = scmp.lt.s32.totalorder (!%p188_p2), %s2297_s19, 1  ;;  %vm225_vm0 = vcmask (!%p188_p2), 588800   ;;  %vm228_vm1 = vcmask (!%p188_p2), 582656   ;;  %v3373_v0 = vmov (!%p188_p2), 0.0   ;;  %s3374_s24 = smov (!%p188_p2), 4   ;;  %v371_v3 = vld [vmem:[%s4759_s1 + $0x80] sm:$0xff] (!%p188_p2) }
   0x6   : > { %191 = sbr.rel (%p188_p2) target bundleno = 1559 (0x617), region = 40  ;;  %226 = vst.msk [vmem:[#allocation2] sm:$0xff] (!%p188_p2), %vm225_vm0, %v3373_v0  ;;  %227 = vst.msk [vmem:[#allocation2 + $0x8] sm:$0xff] (!%p188_p2), %vm225_vm0, %v3373_v0  ;;  %v372_v4 = vld [vmem:[%s4759_s1 + $0x88] sm:$0xff] (!%p188_p2)  ;;  %v355_v5 = vld [vmem:[%s4759_s1] sm:$0xff] (!%p188_p2)  ;;  %vm248_vm2 = vcmask (!%p188_p2), 556064  }
   0x7   : > { %230 = vst [vmem:[#allocation3] sm:$0xff] (!%p188_p2), %v3373_v0  ;;  %233 = vst [vmem:[#allocation3 + $0x10] sm:$0xff] (!%p188_p2), %v3373_v0  ;;  %v2828_v6 = vpack.c.bf16 (!%p188_p2), %v372_v4, %v371_v3  ;;  %v356_v7 = vld [vmem:[%s4759_s1 + $0x8] sm:$0xff] (!%p188_p2)  ;;  %v373_v8 = vld [vmem:[%s4759_s1 + $0x90] sm:$0xff] (!%p188_p2)  ;;  %vm253_vm3 = vcmask (!%p188_p2), 523264   ;;  %s3375_s14 = smov (!%p188_p2), 120  }
   0x8   : > { %235 = vst [vmem:[#allocation3 + $0x20] sm:$0x3] (!%p188_p2), %v3373_v0  ;;  %229 = vst.msk [vmem:[#allocation2 + $0x10] sm:$0x3] (!%p188_p2), %vm228_vm1, %v3373_v0  ;;  %v374_v9 = vld [vmem:[%s4759_s1 + $0x98] sm:$0xff] (!%p188_p2)  ;;  %v2830_v10 = vpack.c.bf16 (!%p188_p2), %v356_v7, %v355_v5  ;;  %v357_v12 = vld [vmem:[%s4759_s1 + $0x10] sm:$0xff] (!%p188_p2) }
   0x9   : > { %v2832_v11 = vpack.c.bf16 (!%p188_p2), %v374_v9, %v373_v8  ;;  %v358_v13 = vld [vmem:[%s4759_s1 + $0x18] sm:$0xff] (!%p188_p2)  ;;  %v375_v14 = vld [vmem:[%s4759_s1 + $0xa0] sm:$0xff] (!%p188_p2)  ;;  %2829 = vmatprep.subr.bf16.mxu0 (!%p188_p2), %v2828_v6  ;;  %v376_v15 = vld [vmem:[%s4759_s1 + $0xa8] sm:$0xff] (!%p188_p2)  ;;  %s3376_s15 = smov (!%p188_p2), 60   ;;  %s3377_s27 = smov (!%p188_p2), 64   ;;  %vm266_vm4 = vcmask (!%p188_p2), 1048064  }
   0xa   : > { %v403_v16 = vld [vmem:[%s4759_s1 + $0x180] sm:$0xff] (!%p188_p2)  ;;  %v404_v17 = vld [vmem:[%s4759_s1 + $0x188] sm:$0xff] (!%p188_p2)  ;;  %2831 = vmatpush3.bf16.msra.mxu0 (!%p188_p2), %v2830_v10  ;;  %v2834_v18 = vpack.c.bf16 (!%p188_p2), %v358_v13, %v357_v12  ;;  %v2836_v22 = vpack.c.bf16 (!%p188_p2), %v376_v15, %v375_v14  ;;  %v377_v25 = vld [vmem:[%s4759_s1 + $0xb0] sm:$0xff] (!%p188_p2)  ;;  %s3378_s28 = smov (!%p188_p2), 56   ;;  %s3379_s29 = smov (!%p188_p2), 124   ;;  %vm231_vm5 = vcmask (!%p188_p2), 130048  }
   0xb   : > { %v2860_v19 = vpack.c.bf16 (!%p188_p2), %v404_v17, %v403_v16  ;;  %v359_v20 = vld [vmem:[%s4759_s1 + $0x20] sm:$0xff] (!%p188_p2)  ;;  %2833 = vmatprep.subr.bf16.mxu0 (!%p188_p2), %v2832_v11  ;;  %v360_v23 = vld [vmem:[%s4759_s1 + $0x28] sm:$0xff] (!%p188_p2)  ;;  %v378_v27 = vld [vmem:[%s4759_s1 + $0xb8] sm:$0xff] (!%p188_p2)  ;;  %232 = vst.msk [vmem:[#allocation3 + $0x8] sm:$0xff] (!%p188_p2), %vm231_vm5, %v3373_v0  ;;  %vm236_vm6 = vcmask (!%p188_p2), 123904   ;;  %vm669_vm7 = vcmask (!%p188_p2), 1040384  }
   0xc   : > { %v387_v21 = vld [vmem:[%s4759_s1 + $0x100] sm:$0xff] (!%p188_p2)  ;;  %v388_v24 = vld [vmem:[%s4759_s1 + $0x108] sm:$0xff] (!%p188_p2)  ;;  %v405_v28 = vld [vmem:[%s4759_s1 + $0x190] sm:$0xff] (!%p188_p2)  ;;  %v2838_v33 = vpack.c.bf16 (!%p188_p2), %v360_v23, %v359_v20  ;;  %v2840_v37 = vpack.c.bf16 (!%p188_p2), %v378_v27, %v377_v25  ;;  %234 = vst.msk [vmem:[#allocation3 + $0x18] sm:$0xff] (!%p188_p2), %vm231_vm5, %v3373_v0  ;;  %vm682_vm8 = vcmask (!%p188_p2), 1047617   ;;  %vm684_vm9 = vcmask (!%p188_p2), 64513  }
   0xd   : > { %s4765_s19 = smov (!%p215_p3, %s2297_s19), 1  ;;  %2861 = vmatprep.subr.bf16.mxu1 %v2860_v19  ;;  %v2862_v26 = vpack.c.bf16 %v388_v24, %v387_v21  ;;  %v406_v29 = vld [vmem:[%s4759_s1 + $0x198] sm:$0xff]  ;;  %v389_v31 = vld [vmem:[%s4759_s1 + $0x110] sm:$0xff]  ;;  %v407_v36 = vld [vmem:[%s4759_s1 + $0x1a0] sm:$0xff]  ;;  %237 = vst.msk [vmem:[#allocation3 + $0x28] sm:$0x3] %vm236_vm6, %v3373_v0 }
   0xe   : > { %s2311_s20 = sshll.u32 %s4765_s19, 4  ;;  %v2864_v30 = vpack.c.bf16 %v406_v29, %v405_v28  ;;  %v390_v32 = vld [vmem:[%s4759_s1 + $0x118] sm:$0xff]  ;;  %2835 = vmatpush3.bf16.msra.mxu0 %v2834_v18  ;;  %v361_v34 = vld [vmem:[%s4759_s1 + $0x30] sm:$0xff]  ;;  %v379_v39 = vld [vmem:[%s4759_s1 + $0xc0] sm:$0xff]  ;;  %vm690_vm10 = vcmask 1040448   ;;  %vm692_vm11 = vcmask 57344  }
   0xf   : > { %s219_s23 = scalar_lea.vmem %s4758_s0, %s2311_s20  ;;  %2863 = vmatpush3.bf16.msra.mxu1 %v2862_v26  ;;  %v2866_v35 = vpack.c.bf16 %v390_v32, %v389_v31  ;;  %2837 = vmatprep.subr.bf16.mxu0 %v2836_v22  ;;  %v362_v38 = vld [vmem:[%s4759_s1 + $0x38] sm:$0xff]  ;;  %v408_v40 = vld [vmem:[%s4759_s1 + $0x1a8] sm:$0xff]  ;;  %v391_v43 = vld [vmem:[%s4759_s1 + $0x120] sm:$0xff]  ;;  %vm686_vm12 = vcmask 1047616   ;;  %vm688_vm13 = vcmask 64512   ;;  %s3381_s16 = smov 112  }
  0x10   : > { %v238_v1 = vld [vmem:[%s219_s23] sm:$0xff]  ;;  %v239_v2 = vld [vmem:[%s219_s23 + $0x8] sm:$0xff]  ;;  %2865 = vmatprep.subr.bf16.mxu1 %v2864_v30  ;;  %v2868_v42 = vpack.c.bf16 %v408_v40, %v407_v36  ;;  %v2842_v45 = vpack.c.bf16 %v362_v38, %v361_v34  ;;  %v381_v51 = vld [vmem:[%s4759_s1 + $0xd0] sm:$0xff]  ;;  %s3380_s23 = smov 8   ;;  %vm750_vm14 = vcmask 1046528   ;;  %vm838_vm15 = vcmask 1045504   ;;  %s224_s11 = scalar_lea.vmem %s4763_s5, %s2311_s20 }
  0x11   : > { %242 = vrot.lane.b32.xlu0 %v238_v1, %s3374_s24  ;;  %v380_v41 = vld [vmem:[%s4759_s1 + $0xc8] sm:$0xff]  ;;  %v363_v48 = vld [vmem:[%s4759_s1 + $0x40] sm:$0xff]  ;;  %v382_v52 = vld [vmem:[%s4759_s1 + $0xd8] sm:$0xff]  ;;  %vm714_vm0 = vcmask 982016   ;;  %vm737_vm1 = vcmask 916480  }
  0x12   : > { %v392_v44 = vld [vmem:[%s4759_s1 + $0x128] sm:$0xff]  ;;  %2839 = vmatpush3.bf16.msra.mxu0 %v2838_v33  ;;  %v2844_v47 = vpack.c.bf16 %v380_v41, %v379_v39  ;;  %v409_v53 = vld [vmem:[%s4759_s1 + $0x1b0] sm:$0xff]  ;;  %v2848_v54 = vpack.c.bf16 %v382_v52, %v381_v51  ;;  %v410_v55 = vld [vmem:[%s4759_s1 + $0x1b8] sm:$0xff] }
  0x13   : > { %2867 = vmatpush3.bf16.msra.mxu1 %v2866_v35  ;;  %v2870_v46 = vpack.c.bf16 %v392_v44, %v391_v43  ;;  %2841 = vmatprep.subr.bf16.mxu0 %v2840_v37  ;;  %v364_v49 = vld [vmem:[%s4759_s1 + $0x48] sm:$0xff]  ;;  %v365_v56 = vld [vmem:[%s4759_s1 + $0x50] sm:$0xff]  ;;  %v366_v57 = vld [vmem:[%s4759_s1 + $0x58] sm:$0xff]  ;;  %v2872_v58 = vpack.c.bf16 %v410_v55, %v409_v53 }
  0x14   : > { %2869 = vmatprep.subr.bf16.mxu1 %v2868_v42  ;;  %v2846_v50 = vpack.c.bf16 %v364_v49, %v363_v48  ;;  %v2850_v59 = vpack.c.bf16 %v366_v57, %v365_v56  ;;  %v393_v60 = vld [vmem:[%s4759_s1 + $0x130] sm:$0xff]  ;;  %v394_v61 = vld [vmem:[%s4759_s1 + $0x138] sm:$0xff]  ;;  %v383_v63 = vld [vmem:[%s4759_s1 + $0xe0] sm:$0xff] }
  0x15   : > { %244 = vrot.lane.b32.xlu0 %v239_v2, %s3374_s24  ;;  %v2874_v62 = vpack.c.bf16 %v394_v61, %v393_v60  ;;  %v384_v1 = vld [vmem:[%s4759_s1 + $0xe8] sm:$0xff]  ;;  %v411_v2 = vld [vmem:[%s4759_s1 + $0x1c0] sm:$0xff]  ;;  %v385_v13 = vld [vmem:[%s4759_s1 + $0xf0] sm:$0xff] }
  0x16   : > { %2843 = vmatpush3.bf16.msra.mxu0 %v2842_v45  ;;  %v2852_v3 = vpack.c.bf16 %v384_v1, %v383_v63  ;;  %v412_v4 = vld [vmem:[%s4759_s1 + $0x1c8] sm:$0xff]  ;;  %v367_v5 = vld [vmem:[%s4759_s1 + $0x60] sm:$0xff]  ;;  %v386_v14 = vld [vmem:[%s4759_s1 + $0xf8] sm:$0xff] }
  0x17   : > { %2871 = vmatpush3.bf16.msra.mxu1 %v2870_v46  ;;  %2845 = vmatprep.subr.bf16.mxu0 %v2844_v47  ;;  %v368_v6 = vld [vmem:[%s4759_s1 + $0x68] sm:$0xff]  ;;  %v2876_v8 = vpack.c.bf16 %v412_v4, %v411_v2  ;;  %v395_v10 = vld [vmem:[%s4759_s1 + $0x140] sm:$0xff]  ;;  %v413_v15 = vld [vmem:[%s4759_s1 + $0x1d0] sm:$0xff]  ;;  %v2856_v16 = vpack.c.bf16 %v386_v14, %v385_v13 }
  0x18   : > { %2873 = vmatprep.subr.bf16.mxu1 %v2872_v58  ;;  %v2854_v9 = vpack.c.bf16 %v368_v6, %v367_v5  ;;  %v396_v11 = vld [vmem:[%s4759_s1 + $0x148] sm:$0xff]  ;;  %v414_v17 = vld [vmem:[%s4759_s1 + $0x1d8] sm:$0xff]  ;;  %v369_v18 = vld [vmem:[%s4759_s1 + $0x70] sm:$0xff] }
  0x19   : > { %v2878_v12 = vpack.c.bf16 %v396_v11, %v395_v10  ;;  %v370_v19 = vld [vmem:[%s4759_s1 + $0x78] sm:$0xff]  ;;  %v2880_v21 = vpack.c.bf16 %v414_v17, %v413_v15  ;;  %v397_v23 = vld [vmem:[%s4759_s1 + $0x150] sm:$0xff]  ;;  %v415_v26 = vld [vmem:[%s4759_s1 + $0x1e0] sm:$0xff] }
  0x1a   : > { %2847 = vmatpush3.bf16.msra.mxu0 %v2846_v50  ;;  %v2858_v22 = vpack.c.bf16 %v370_v19, %v369_v18  ;;  %v398_v24 = vld [vmem:[%s4759_s1 + $0x158] sm:$0xff]  ;;  %v416_v27 = vld [vmem:[%s4759_s1 + $0x1e8] sm:$0xff]  ;;  %v419_v28 = vld [vmem:[%s4759_s1 + $0x200] sm:$0xff] }
  0x1b   : > { %2849 = vmatprep.subr.bf16.mxu0 %v2848_v54  ;;  %2875 = vmatpush3.bf16.msra.mxu1 %v2874_v62  ;;  %v2882_v25 = vpack.c.bf16 %v398_v24, %v397_v23  ;;  %v2884_v29 = vpack.c.bf16 %v416_v27, %v415_v26  ;;  %v420_v30 = vld [vmem:[%s4759_s1 + $0x208] sm:$0xff]  ;;  %v399_v31 = vld [vmem:[%s4759_s1 + $0x160] sm:$0xff]  ;;  %v417_v36 = vld [vmem:[%s4759_s1 + $0x1f0] sm:$0xff] }
  0x1c   : > { %2877 = vmatprep.subr.bf16.mxu1 %v2876_v8  ;;  %v400_v32 = vld [vmem:[%s4759_s1 + $0x168] sm:$0xff]  ;;  %v3622_v34 = vpack.c.bf16 %v420_v30, %v419_v28  ;;  %v418_v37 = vld [vmem:[%s4759_s1 + $0x1f8] sm:$0xff]  ;;  %v401_v40 = vld [vmem:[%s4759_s1 + $0x170] sm:$0xff] }
  0x1d   : > { %v2886_v35 = vpack.c.bf16 %v400_v32, %v399_v31  ;;  %v2888_v39 = vpack.c.bf16 %v418_v37, %v417_v36  ;;  %v402_v41 = vld [vmem:[%s4759_s1 + $0x178] sm:$0xff]  ;;  %v421_v53 = vld [vmem:[%s4759_s1 + $0x210] sm:$0xff]  ;;  %v423_v60 = vld [vmem:[%s4759_s1 + $0x220] sm:$0xff] }
  0x1e   : > { %2851 = vmatpush3.bf16.msra.mxu0 %v2850_v59  ;;  %v2890_v45 = vpack.c.bf16 %v402_v41, %v401_v40  ;;  %v422_v54 = vld [vmem:[%s4759_s1 + $0x218] sm:$0xff]  ;;  %v424_v61 = vld [vmem:[%s4759_s1 + $0x228] sm:$0xff]  ;;  %v425_v4 = vld [vmem:[%s4759_s1 + $0x230] sm:$0xff] }
  0x1f   : > { %2853 = vmatprep.subr.bf16.mxu0 %v2852_v3  ;;  %2879 = vmatpush3.bf16.msra.mxu1 %v2878_v12  ;;  %v2896_v58 = vpack.c.bf16 %v422_v54, %v421_v53  ;;  %v2900_v2 = vpack.c.bf16 %v424_v61, %v423_v60  ;;  %v426_v5 = vld [vmem:[%s4759_s1 + $0x238] sm:$0xff]  ;;  %v970_v53 = vld [vmem:[%s4761_s3 + $0x100] sm:$0xff]  ;;  %v988_v60 = vld [vmem:[%s4761_s3 + $0x190] sm:$0xff] }
  0x20   : > { %2881 = vmatprep.subr.bf16.mxu1 %v2880_v21  ;;  %v2904_v8 = vpack.c.bf16 %v426_v5, %v425_v4  ;;  %v989_v61 = vld [vmem:[%s4761_s3 + $0x198] sm:$0xff] }
  0x22   : > { %2855 = vmatpush3.bf16.msra.mxu0 %v2854_v9 }
  0x23   : > { %2857 = vmatprep.subr.bf16.mxu0 %v2856_v16  ;;  %2883 = vmatpush3.bf16.msra.mxu1 %v2882_v25 }
  0x24   : > { %2885 = vmatprep.subr.bf16.mxu1 %v2884_v29 }
  0x26   : > { %2859 = vmatpush3.bf16.msra.mxu0 %v2858_v22 }
  0x27   : > { %2893 = vmatprep.subr.bf16.mxu0 %v3622_v34  ;;  %2887 = vmatpush3.bf16.msra.mxu1 %v2886_v35 }
  0x28   : > { %2889 = vmatprep.subr.bf16.mxu1 %v2888_v39 }
  0x2b   : > { %2891 = vmatpush3.bf16.msra.mxu1 %v2890_v45 }
  0x83   : > { %v243_v7 = vpop.permute.xlu0 %242 }
  0x84   : > { %249 = vst.msk [vmem:[#allocation2 + $0x1] sm:$0xff] %vm248_vm2, %v243_v7 }
  0x87   : > { %v245_v20 = vpop.permute.xlu0 %244 }
  0x88   : > { %250 = vst.msk [vmem:[#allocation2 + $0x9] sm:$0xff] %vm248_vm2, %v245_v20  ;;  %v2306_v20 = vld [vmem:[%s4760_s2] ss:$0 sm:$0xff] }
  0x8b   : > { %v269_v33 = vld [vmem:[#allocation2] sm:$0xff] }
  0x8c   : > { %273 = vrot.lane.b32.xlu1 %v269_v33, %s3375_s14  ;;  %260 = vrot.lane.b32.xlu0 %v269_v33, %s3376_s15  ;;  %254 = vst.msk [vmem:[#allocation4] sm:$0xff] %vm253_vm3, %v269_v33  ;;  %v281_v38 = vld [vmem:[#allocation2 + $0x1] sm:$0xff] }
  0x8f   : > { %v282_v42 = vld [vmem:[#allocation2 + $0x9] sm:$0xff] }
  0x90   : > { %v321_v43 = vld [vmem:[#allocation2 + $0x2] sm:$0xff]  ;;  %285 = vrot.lane.b32.xlu1 %v281_v38, %s3377_s27  ;;  %287 = vrot.lane.b32.xlu0 %v282_v42, %s3377_s27  ;;  %v334_v46 = vld [vmem:[#allocation2 + $0xa] sm:$0xff] }
  0x91   : > { %v270_v44 = vld [vmem:[#allocation2 + $0x8] sm:$0xff]  ;;  %319 = vst.msk [vmem:[#allocation4 + $0x18] sm:$0xff] %vm253_vm3, %v321_v43  ;;  %320 = vst.msk [vmem:[#allocation4 + $0x40] sm:$0xff] %vm253_vm3, %v334_v46 }
  0x92   : > { %255 = vst.msk [vmem:[#allocation4 + $0x28] sm:$0xff] %vm253_vm3, %v270_v44 }
  0x94   : > { %325 = vrot.lane.b32.xlu0 %v321_v43, %s3376_s15  ;;  %275 = vrot.lane.b32.xlu1 %v270_v44, %s3375_s14 }
  0x98   : > { %309 = vrot.lane.b32.xlu0 %v281_v38, %s3378_s28  ;;  %297 = vrot.lane.b32.xlu1 %v281_v38, %s3379_s29 }
  0x9c   : > { %339 = vrot.lane.b32.xlu0 %v334_v46, %s3375_s14  ;;  %262 = vrot.lane.b32.xlu1 %v270_v44, %s3376_s15  ;;  %v938_v44 = vld [vmem:[%s4761_s3] sm:$0xff] }
  0xa0   : > { %327 = vrot.lane.b32.xlu0 %v334_v46, %s3376_s15  ;;  %337 = vrot.lane.b32.xlu1 %v321_v43, %s3375_s14  ;;  %v955_v43 = vld [vmem:[%s4761_s3 + $0x88] sm:$0xff] }
  0xa1   : > { %v939_v46 = vld [vmem:[%s4761_s3 + $0x8] sm:$0xff] }
  0xa4   : > { %299 = vrot.lane.b32.xlu1 %v282_v42, %s3379_s29 }
  0xa8   : > { %311 = vrot.lane.b32.xlu1 %v282_v42, %s3378_s28  ;;  %v954_v42 = vld [vmem:[%s4761_s3 + $0x80] sm:$0xff] }
  0xa9   : > { %v2908_v45 = vpack.c.bf16 %v955_v43, %v954_v42  ;;  %v996_v43 = vld [vmem:[%s4761_s3 + $0x1d0] sm:$0xff] }
  0xab   : > { %2909 = vmatprep.subr.bf16.mxu1 %v2908_v45 }
  0xfe   : > { %v274_v47 = vpop.permute.xlu1 %273  ;;  %v261_v48 = vpop.permute.xlu0 %260 }
  0xff   : > { %279 = vst.msk [vmem:[#allocation4 + $0x8] sm:$0xff] %vm253_vm3, %v274_v47  ;;  %v986_v47 = vld [vmem:[%s4761_s3 + $0x180] sm:$0xff] }
 0x100   : > { %267 = vst.msk [vmem:[#allocation4] sm:$0xff] %vm266_vm4, %v261_v48  ;;  %v987_v48 = vld [vmem:[%s4761_s3 + $0x188] sm:$0xff] }
 0x102   : > { %v286_v49 = vpop.permute.xlu1 %285  ;;  %v288_v50 = vpop.permute.xlu0 %287 }
 0x103   : > { %291 = vst.msk [vmem:[#allocation4 + $0x8] sm:$0xff] %vm266_vm4, %v286_v49  ;;  %v2910_v49 = vpack.c.bf16 %v939_v46, %v938_v44  ;;  %v997_v44 = vld [vmem:[%s4761_s3 + $0x1d8] sm:$0xff]  ;;  %v948_v46 = vld [vmem:[%s4761_s3 + $0x50] sm:$0xff] }
 0x106   : > { %v276_v51 = vpop.permute.xlu1 %275  ;;  %v326_v52 = vpop.permute.xlu0 %325 }
 0x107   : > { %280 = vst.msk [vmem:[#allocation4 + $0x30] sm:$0xff] %vm253_vm3, %v276_v51  ;;  %v345_v59 = vld [vmem:[#allocation4] sm:$0xff]  ;;  %v956_v51 = vld [vmem:[%s4761_s3 + $0x90] sm:$0xff] }
 0x108   : > { %331 = vst.msk [vmem:[#allocation4 + $0x18] sm:$0xff] %vm266_vm4, %v326_v52  ;;  %292 = vst.msk [vmem:[#allocation4 + $0x30] sm:$0xff] %vm266_vm4, %v288_v50  ;;  %v2940_v50 = vpack.c.bf16 %v987_v48, %v986_v47  ;;  %v957_v52 = vld [vmem:[%s4761_s3 + $0x98] sm:$0xff] }
 0x109   : > { %v2912_v54 = vpack.c.bf16 %v957_v52, %v956_v51  ;;  %v949_v47 = vld [vmem:[%s4761_s3 + $0x58] sm:$0xff]  ;;  %v2960_v51 = vpack.c.bf16 %v997_v44, %v996_v43  ;;  %v980_v52 = vld [vmem:[%s4761_s3 + $0x150] sm:$0xff] }
 0x10a   : > { %v298_v55 = vpop.permute.xlu1 %297  ;;  %v310_v56 = vpop.permute.xlu0 %309  ;;  %v346_v57 = vld [vmem:[#allocation4 + $0x8] sm:$0xff] }
 0x10b   : > { %303 = vst.msk [vmem:[#allocation4 + $0x10] sm:$0xff] %vm253_vm3, %v298_v55  ;;  %504 = vmatprep.mubr.f32.mxu0 %v346_v57  ;;  %v971_v55 = vld [vmem:[%s4761_s3 + $0x108] sm:$0xff]  ;;  %v941_v57 = vld [vmem:[%s4761_s3 + $0x18] sm:$0xff] }
 0x10c   : > { %315 = vst.msk [vmem:[#allocation4 + $0x10] sm:$0xff] %vm266_vm4, %v310_v56  ;;  %505 = vmatmul.mubr.f32.vlgmr.msra.gmra.mrb[0].mxu0 %v345_v59  ;;  %v940_v56 = vld [vmem:[%s4761_s3 + $0x10] sm:$0xff] }
 0x10d   : > { %2895 = vmatpush3.bf16.msra.mxu0 %v3622_v34  ;;  %v2914_v59 = vpack.c.bf16 %v941_v57, %v940_v56  ;;  %v999_v56 = vld [vmem:[%s4761_s3 + $0x1e8] sm:$0xff] }
 0x10e   : > { %v263_v62 = vpop.permute.xlu1 %262  ;;  %v340_v63 = vpop.permute.xlu0 %339  ;;  %2897 = vmatprep.subr.bf16.mxu0 %v2896_v58 }
 0x10f   : > { %v348_v1 = vld [vmem:[#allocation4 + $0x18] sm:$0xff]  ;;  %268 = vst.msk [vmem:[#allocation4 + $0x28] sm:$0xff] %vm266_vm4, %v263_v62  ;;  %v351_v3 = vld [vmem:[#allocation4 + $0x30] sm:$0xff] }
 0x110   : > { %344 = vst.msk [vmem:[#allocation4 + $0x48] sm:$0xff] %vm253_vm3, %v340_v63  ;;  %579 = vmatprep.mubr.f32.mxu1 %v348_v1  ;;  %509 = vmatprep.mubr.f32.mxu0 %v351_v3  ;;  %v958_v62 = vld [vmem:[%s4761_s3 + $0xa0] sm:$0xff]  ;;  %v2944_v63 = vpack.c.bf16 %v989_v61, %v988_v60  ;;  %v959_v1 = vld [vmem:[%s4761_s3 + $0xa8] sm:$0xff]  ;;  %v973_v3 = vld [vmem:[%s4761_s3 + $0x118] sm:$0xff] }
 0x111   : > { %2899 = vmatpush3.bf16.msra.mxu0 %v2896_v58  ;;  %v2942_v58 = vpack.c.bf16 %v971_v55, %v970_v53  ;;  %v2916_v4 = vpack.c.bf16 %v959_v1, %v958_v62  ;;  %v981_v53 = vld [vmem:[%s4761_s3 + $0x158] sm:$0xff]  ;;  %v998_v55 = vld [vmem:[%s4761_s3 + $0x1e0] sm:$0xff]  ;;  %v968_v61 = vld [vmem:[%s4761_s3 + $0xf0] sm:$0xff] }
 0x112   : > { %v338_v6 = vpop.permute.xlu1 %337  ;;  %v328_v7 = vpop.permute.xlu0 %327  ;;  %2901 = vmatprep.subr.bf16.mxu0 %v2900_v2  ;;  %v2962_v60 = vpack.c.bf16 %v981_v53, %v980_v52  ;;  %v969_v62 = vld [vmem:[%s4761_s3 + $0xf8] sm:$0xff]  ;;  %v982_v1 = vld [vmem:[%s4761_s3 + $0x160] sm:$0xff] }
 0x113   : > { %343 = vst.msk [vmem:[#allocation4 + $0x20] sm:$0xff] %vm253_vm3, %v338_v6  ;;  %v347_v9 = vld [vmem:[#allocation4 + $0x10] sm:$0xff]  ;;  %v942_v6 = vld [vmem:[%s4761_s3 + $0x20] sm:$0xff] }
 0x114   : > { %332 = vst.msk [vmem:[#allocation4 + $0x40] sm:$0xff] %vm266_vm4, %v328_v7  ;;  %580 = vmatmul.mubr.f32.vlgmr.msra.gmra.mrb[0].mxu1 %v347_v9  ;;  %v943_v7 = vld [vmem:[%s4761_s3 + $0x28] sm:$0xff] }
 0x115   : > { %2903 = vmatpush3.bf16.msra.mxu0 %v2900_v2  ;;  %2911 = vmatpush3.bf16.msra.mxu1 %v2910_v49  ;;  %v972_v2 = vld [vmem:[%s4761_s3 + $0x110] sm:$0xff]  ;;  %v991_v9 = vld [vmem:[%s4761_s3 + $0x1a8] sm:$0xff]  ;;  %v966_v49 = vld [vmem:[%s4761_s3 + $0xe0] sm:$0xff] }
 0x116   : > { %v300_v10 = vpop.permute.xlu1 %299  ;;  %v350_v11 = vld [vmem:[#allocation4 + $0x28] sm:$0xff]  ;;  %2905 = vmatprep.subr.bf16.mxu0 %v2904_v8  ;;  %2913 = vmatprep.subr.bf16.mxu1 %v2912_v54  ;;  %v2946_v5 = vpack.c.bf16 %v973_v3, %v972_v2  ;;  %v2930_v54 = vpack.c.bf16 %v949_v47, %v948_v46  ;;  %v983_v2 = vld [vmem:[%s4761_s3 + $0x168] sm:$0xff] }
 0x117   : > { %304 = vst.msk [vmem:[#allocation4 + $0x38] sm:$0xff] %vm253_vm3, %v300_v10  ;;  %510 = vmatmul.mubr.f32.gmra.mrb[2].mxu0 %v350_v11  ;;  %v354_v15 = vld [vmem:[#allocation4 + $0x48] sm:$0xff]  ;;  %v961_v11 = vld [vmem:[%s4761_s3 + $0xb8] sm:$0xff] }
 0x118   : > { %v960_v10 = vld [vmem:[%s4761_s3 + $0xb0] sm:$0xff] }
 0x119   : > { %2907 = vmatpush3.bf16.msra.mxu0 %v2904_v8  ;;  %v990_v8 = vld [vmem:[%s4761_s3 + $0x1a0] sm:$0xff]  ;;  %2915 = vmatpush3.bf16.msra.mxu1 %v2914_v59  ;;  %v951_v59 = vld [vmem:[%s4761_s3 + $0x68] sm:$0xff] }
 0x11a   : > { %v312_v12 = vpop.permute.xlu1 %311  ;;  %v349_v14 = vld [vmem:[#allocation4 + $0x20] sm:$0xff]  ;;  %2941 = vmatprep.subr.bf16.mxu0 %v2940_v50  ;;  %2917 = vmatprep.subr.bf16.mxu1 %v2916_v4  ;;  %v2936_v4 = vpack.c.bf16 %v969_v62, %v968_v61 }
 0x11b   : > { %v353_v13 = vld [vmem:[#allocation4 + $0x40] sm:$0xff]  ;;  %316 = vst.msk [vmem:[#allocation4 + $0x38] sm:$0xff] %vm266_vm4, %v312_v12  ;;  %2755 = vmatprep.mubr.msk.f32.mxu0 %vm253_vm3, %v349_v14  ;;  %v2918_v12 = vpack.c.bf16 %v943_v7, %v942_v6  ;;  %v974_v14 = vld [vmem:[%s4761_s3 + $0x120] sm:$0xff]  ;;  %v952_v6 = vld [vmem:[%s4761_s3 + $0x70] sm:$0xff] }
 0x11c   : > { %584 = vmatprep.mubr.f32.mxu1 %v353_v13  ;;  %2756 = vmatmul.mubr.msk.f32.vlgmr.msra.gmra.mrb[4].mxu0 %vm253_vm3, %v354_v15  ;;  %v2948_v13 = vpack.c.bf16 %v991_v9, %v990_v8  ;;  %v975_v15 = vld [vmem:[%s4761_s3 + $0x128] sm:$0xff]  ;;  %v953_v7 = vld [vmem:[%s4761_s3 + $0x78] sm:$0xff]  ;;  %v1000_v8 = vld [vmem:[%s4761_s3 + $0x1f0] sm:$0xff] }
 0x11d   : > { %2943 = vmatpush3.bf16.msra.mxu0 %v2942_v58  ;;  %2919 = vmatpush3.bf16.msra.mxu1 %v2918_v12  ;;  %v967_v50 = vld [vmem:[%s4761_s3 + $0xe8] sm:$0xff]  ;;  %v950_v58 = vld [vmem:[%s4761_s3 + $0x60] sm:$0xff]  ;;  %v2938_v9 = vpack.c.bf16 %v953_v7, %v952_v6  ;;  %v985_v12 = vld [vmem:[%s4761_s3 + $0x178] sm:$0xff] }
 0x11e   : > { %2945 = vmatprep.subr.bf16.mxu0 %v2944_v63  ;;  %v2932_v57 = vpack.c.bf16 %v967_v50, %v966_v49  ;;  %v2964_v63 = vpack.c.bf16 %v999_v56, %v998_v55  ;;  %v2934_v3 = vpack.c.bf16 %v951_v59, %v950_v58 }
 0x121   : > { %2947 = vmatpush3.bf16.msra.mxu0 %v2946_v5  ;;  %v2966_v5 = vpack.c.bf16 %v983_v2, %v982_v1 }
 0x122   : > { %v352_v16 = vld [vmem:[#allocation4 + $0x38] sm:$0xff]  ;;  %2949 = vmatprep.subr.bf16.mxu0 %v2948_v13 }
 0x123   : > { %585 = vmatmul.mubr.f32.gmra.mrb[2].mxu1 %v352_v16  ;;  %v944_v16 = vld [vmem:[%s4761_s3 + $0x30] sm:$0xff] }
 0x1df   : > { %v2345_v17 = vpop.f32.mrb[0].mxu0 }
 0x1e0   : > { %v2346_v18 = vpop.f32.mrb[1].mxu0 }
 0x1e1   : > { %v2347_v19 = vadd.f32 %v2346_v18, %v2345_v17  ;;  %v2920_v17 = vpack.c.bf16 %v961_v11, %v960_v10  ;;  %v945_v18 = vld [vmem:[%s4761_s3 + $0x38] sm:$0xff]  ;;  %v984_v11 = vld [vmem:[%s4761_s3 + $0x170] sm:$0xff] }
 0x1e2   : > { %v1001_v10 = vld [vmem:[%s4761_s3 + $0x1f8] sm:$0xff] }
 0x1e3   : > { %v507_v23 = vadd.f32 %v2347_v19, %v2306_v20  ;;  %v992_v19 = vld [vmem:[%s4761_s3 + $0x1b0] sm:$0xff]  ;;  %2921 = vmatprep.subr.bf16.mxu1 %v2920_v17  ;;  %v1019_v17 = vld [vmem:[%s4761_s3 + $0x288] sm:$0xff] }
 0x1e7   : > { %v2383_v21 = vpop.f32.mrb[0].mxu1 }
 0x1e8   : > { %v2384_v22 = vpop.f32.mrb[1].mxu1 }
 0x1e9   : > { %v2385_v24 = vadd.f32 %v2384_v22, %v2383_v21  ;;  %v2950_v21 = vpack.c.bf16 %v975_v15, %v974_v14  ;;  %v962_v22 = vld [vmem:[%s4761_s3 + $0xc0] sm:$0xff]  ;;  %v2968_v14 = vpack.c.bf16 %v1001_v10, %v1000_v8  ;;  %v2970_v15 = vpack.c.bf16 %v985_v12, %v984_v11 }
 0x1ea   : > { %v2348_v25 = vpop.f32.mrb[2].mxu0 }
 0x1eb   : > { %v2349_v26 = vpop.f32.mrb[3].mxu0  ;;  %v582_v27 = vadd.f32 %v2385_v24, %v507_v23  ;;  %v963_v23 = vld [vmem:[%s4761_s3 + $0xc8] sm:$0xff]  ;;  %2951 = vmatpush3.bf16.msra.mxu0 %v2950_v21 }
 0x1ec   : > { %v2350_v28 = vadd.f32 %v2349_v26, %v2348_v25  ;;  %v976_v25 = vld [vmem:[%s4761_s3 + $0x130] sm:$0xff]  ;;  %v977_v26 = vld [vmem:[%s4761_s3 + $0x138] sm:$0xff] }
 0x1ee   : > { %v512_v36 = vadd.f32 %v2350_v28, %v2306_v20  ;;  %v993_v20 = vld [vmem:[%s4761_s3 + $0x1b8] sm:$0xff]  ;;  %v994_v28 = vld [vmem:[%s4761_s3 + $0x1c0] sm:$0xff] }
 0x1ef   : > { %v2757_v29 = vpop.f32.mrb[4].mxu0  ;;  %v2952_v24 = vpack.c.bf16 %v993_v20, %v992_v19  ;;  %v1050_v19 = vld [vmem:[%s4761_s3 + $0x380] sm:$0xff]  ;;  %v1051_v20 = vld [vmem:[%s4761_s3 + $0x388] sm:$0xff] }
 0x1f0   : > { %v656_v30 = vpop.f32.mrb[5].mxu0  ;;  %v3004_v21 = vpack.c.bf16 %v1051_v20, %v1050_v19 }
 0x1f1   : > { %v3689_v31 = vadd.f32 %v656_v30, %v582_v27  ;;  %v2922_v27 = vpack.c.bf16 %v945_v18, %v944_v16  ;;  %v2924_v30 = vpack.c.bf16 %v963_v23, %v962_v22  ;;  %2953 = vmatprep.subr.bf16.mxu0 %v2952_v24  ;;  %v1018_v16 = vld [vmem:[%s4761_s3 + $0x280] sm:$0xff] }
 0x1f2   : > { %v2972_v18 = vpack.c.bf16 %v1019_v17, %v1018_v16 }
 0x1f3   : > { %v665_v32 = vmax.f32 %v3689_v31, 0.0  ;;  %2923 = vmatpush3.bf16.msra.mxu1 %v2922_v27 }
 0x1f4   : > { %2925 = vmatprep.subr.bf16.mxu1 %v2924_v30 }
 0x1f5   : > { %v670_v33 = vrot.slane %v665_v32, 7 }
 0x1f6   : > { %v2386_v34 = vpop.f32.mrb[2].mxu1 }
 0x1f7   : > { %673 = vrot.lane.b32.xlu0 %v670_v33, %s3380_s23  ;;  %v2387_v35 = vpop.f32.mrb[3].mxu1 }
 0x1f8   : > { %v2388_v37 = vadd.f32 %v2387_v35, %v2386_v34  ;;  %v947_v34 = vld [vmem:[%s4761_s3 + $0x48] sm:$0xff]  ;;  %v2954_v35 = vpack.c.bf16 %v977_v26, %v976_v25 }
 0x1fa   : > { %v587_v38 = vadd.f32 %v2388_v37, %v512_v36  ;;  %v964_v36 = vld [vmem:[%s4761_s3 + $0xd0] sm:$0xff]  ;;  %v965_v37 = vld [vmem:[%s4761_s3 + $0xd8] sm:$0xff]  ;;  %2955 = vmatpush3.bf16.msra.mxu0 %v2954_v35 }
 0x1fb   : > { %v2928_v45 = vpack.c.bf16 %v965_v37, %v964_v36 }
 0x1fc   : > { %v3696_v39 = vadd.f32 %v2757_v29, %v587_v38  ;;  %v995_v29 = vld [vmem:[%s4761_s3 + $0x1c8] sm:$0xff] }
 0x1fd   : > { %v2956_v38 = vpack.c.bf16 %v995_v29, %v994_v28 }
 0x1fe   : > { %v666_v40 = vmax.f32 %v3696_v39, 0.0 }
 0x1ff   : > { %2957 = vmatprep.subr.bf16.mxu0 %v2956_v38 }
 0x200   : > { %v671_v41 = vrot.slane %v666_v40, 7 }
 0x202   : > { %677 = vrot.lane.b32.xlu0 %v671_v41, %s3380_s23  ;;  %v672_v0 = vsel %vm669_vm7, %v670_v33, %v671_v41  ;;  %v946_v33 = vld [vmem:[%s4761_s3 + $0x40] sm:$0xff] }
 0x203   : > { %675 = vrot.lane.b32.xlu1 %v672_v0, %s3380_s23  ;;  %v978_v41 = vld [vmem:[%s4761_s3 + $0x140] sm:$0xff]  ;;  %v979_v0 = vld [vmem:[%s4761_s3 + $0x148] sm:$0xff]  ;;  %v2926_v42 = vpack.c.bf16 %v947_v34, %v946_v33 }
 0x204   : > { %v2958_v48 = vpack.c.bf16 %v979_v0, %v978_v41 }
 0x205   : > { %2927 = vmatpush3.bf16.msra.mxu1 %v2926_v42 }
 0x206   : > { %2929 = vmatprep.subr.bf16.mxu1 %v2928_v45  ;;  %2959 = vmatpush3.bf16.msra.mxu0 %v2958_v48 }
 0x207   : > { %2961 = vmatprep.subr.bf16.mxu0 %v2960_v51 }
 0x209   : > { %2931 = vmatpush3.bf16.msra.mxu1 %v2930_v54 }
 0x20a   : > { %2933 = vmatprep.subr.bf16.mxu1 %v2932_v57  ;;  %2963 = vmatpush3.bf16.msra.mxu0 %v2962_v60 }
 0x20b   : > { %2965 = vmatprep.subr.bf16.mxu0 %v2964_v63 }
 0x20d   : > { %2935 = vmatpush3.bf16.msra.mxu1 %v2934_v3 }
 0x20e   : > { %2937 = vmatprep.subr.bf16.mxu1 %v2936_v4  ;;  %2967 = vmatpush3.bf16.msra.mxu0 %v2966_v5 }
 0x20f   : > { %2969 = vmatprep.subr.bf16.mxu0 %v2968_v14 }
 0x211   : > { %2939 = vmatpush3.bf16.msra.mxu1 %v2938_v9 }
 0x212   : > { %2971 = vmatpush3.bf16.msra.mxu0 %v2970_v15  ;;  %2973 = vmatprep.subr.bf16.mxu1 %v2972_v18 }
 0x213   : > { %3005 = vmatprep.subr.bf16.mxu0 %v3004_v21 }
 0x269   : > { %v674_v13 = vpop.permute.xlu0 %673 }
 0x26a   : > { %683 = vst.msk [vmem:[#allocation3] sm:$0xfe] %vm682_vm8, %v674_v13 }
 0x26b   : > { %685 = vst.msk [vmem:[#allocation3 + $0x8] sm:$0xfe] %vm684_vm9, %v674_v13 }
 0x271   : > { %v3910_v22 = vld [vmem:[#allocation3] sm:$0xff] }
 0x272   : > { %v699_v23 = vld [vmem:[#allocation3 + $0x8] sm:$0xff]  ;;  %v744_v27 = vld [vmem:[#allocation3] sm:$0xfe] }
 0x273   : > { %v3245_v24 = vpack.i.bf16 %v699_v23, %v3910_v22  ;;  %v760_v28 = vld [vmem:[#allocation3] sm:$0xfe]  ;;  %v761_v29 = vld [vmem:[#allocation3 + $0x8] sm:$0xfe]  ;;  %v751_v33 = vrot.slane %v744_v27, 1 }
 0x274   : > { %v678_v25 = vpop.permute.xlu0 %677  ;;  %v796_v30 = vld [vmem:[#allocation3] sm:$0xfe]  ;;  %v797_v34 = vld [vmem:[#allocation3 + $0x8] sm:$0xfe]  ;;  %v772_v41 = vrot.slane %v760_v28, 1  ;;  %v775_v0 = vrot.slane %v761_v29, 1 }
 0x275   : > { %3246 = vrot.lane.b32.xlu1 %v3245_v24, %s3375_s14  ;;  %691 = vst.msk [vmem:[#allocation3 + $0x20] sm:$0x1] %vm690_vm10, %v678_v25  ;;  %v676_v26 = vpop.permute.xlu1 %675  ;;  %v808_v42 = vrot.slane %v796_v30, 1  ;;  %v811_v49 = vrot.slane %v797_v34, 1  ;;  %v848_v62 = vld [vmem:[#allocation3] sm:$0xfc] }
 0x276   : > { %693 = vst.msk [vmem:[#allocation3 + $0x28] sm:$0x1] %vm692_vm11, %v678_v25  ;;  %v849_v63 = vld [vmem:[#allocation3 + $0x8] sm:$0xfc]  ;;  %v860_v6 = vrot.slane %v848_v62, 2 }
 0x277   : > { %687 = vst.msk [vmem:[#allocation3 + $0x10] sm:$0xff] %vm686_vm12, %v676_v26  ;;  %v863_v7 = vrot.slane %v849_v63, 2  ;;  %v884_v12 = vld [vmem:[#allocation3] sm:$0xfc]  ;;  %v885_v13 = vld [vmem:[#allocation3 + $0x8] sm:$0xfc] }
 0x278   : > { %689 = vst.msk [vmem:[#allocation3 + $0x18] sm:$0xff] %vm688_vm13, %v676_v26  ;;  %v896_v19 = vrot.slane %v884_v12, 2  ;;  %v899_v20 = vrot.slane %v885_v13, 2  ;;  %v1025_v12 = vld [vmem:[%s4761_s3 + $0x2b8] sm:$0xff] }
 0x279   : > { %3251 = vrot.lane.b32.xlu1 %v3245_v24, %s3381_s16 }
 0x27c   : > { %v800_v35 = vld [vmem:[#allocation3 + $0x20] sm:$0x1] }
 0x27d   : > { %v801_v36 = vld [vmem:[#allocation3 + $0x28] sm:$0x1]  ;;  %v814_v43 = vrot.slane %v800_v35, 1  ;;  %v764_v48 = vld [vmem:[#allocation3 + $0x20] sm:$0x1] }
 0x27e   : > { %v3919_v37 = vld [vmem:[#allocation3 + $0x10] sm:$0xff]  ;;  %v816_v47 = vrot.slane %v801_v36, 1  ;;  %v765_v50 = vld [vmem:[#allocation3 + $0x28] sm:$0x1]  ;;  %v778_v57 = vrot.slane %v764_v48, 1 }
 0x27f   : > { %v701_v38 = vld [vmem:[#allocation3 + $0x18] sm:$0xff]  ;;  %v3923_v45 = vrot.slane %v3919_v37, 1  ;;  %v780_v61 = vrot.slane %v765_v50, 1  ;;  %v3939_v1 = vrot.slane %v3919_v37, 2  ;;  %v888_v3 = vld [vmem:[#allocation3 + $0x20] sm:$0x3] }
 0x280   : > { %v3255_v44 = vpack.i.bf16 %v701_v38, %v3919_v37  ;;  %v776_v46 = vrot.slane %v701_v38, 1  ;;  %v864_v2 = vrot.slane %v701_v38, 2  ;;  %v889_v4 = vld [vmem:[#allocation3 + $0x28] sm:$0x3]  ;;  %v902_v10 = vrot.slane %v888_v3, 2  ;;  %v1003_v38 = vld [vmem:[%s4761_s3 + $0x208] sm:$0xff] }
 0x281   : > { %v753_v51 = vsel %vm750_vm14, %v751_v33, %v3923_v45  ;;  %v774_v52 = vsel %vm750_vm14, %v772_v41, %v3923_v45  ;;  %v810_v54 = vsel %vm750_vm14, %v808_v42, %v3923_v45  ;;  %v815_v59 = vsel %vm750_vm14, %v3923_v45, %v814_v43  ;;  %v852_v16 = vld [vmem:[#allocation3 + $0x20] sm:$0x3]  ;;  %v853_v17 = vld [vmem:[#allocation3 + $0x28] sm:$0x3]  ;;  %v1004_v50 = vld [vmem:[%s4761_s3 + $0x210] sm:$0xff] }
 0x282   : > { %3256 = vrot.lane.b32.xlu0 %v3255_v44, %s3375_s14  ;;  %v777_v53 = vsel %vm750_vm14, %v775_v0, %v776_v46  ;;  %1221 = vmatprep.mubr.f32.mxu0 %v753_v51  ;;  %v813_v56 = vsel %vm750_vm14, %v811_v49, %v776_v46  ;;  %v817_v60 = vsel %vm750_vm14, %v776_v46, %v816_v47  ;;  %v904_v11 = vrot.slane %v889_v4, 2  ;;  %v1002_v36 = vld [vmem:[%s4761_s3 + $0x200] sm:$0xff]  ;;  %v1020_v0 = vld [vmem:[%s4761_s3 + $0x290] sm:$0xff]  ;;  %v1021_v42 = vld [vmem:[%s4761_s3 + $0x298] sm:$0xff] }
 0x283   : > { %v3265_v55 = vpack.i.bf16 %v777_v53, %v774_v52  ;;  %v3260_v58 = vpack.i.bf16 %v813_v56, %v810_v54  ;;  %v3275_v5 = vpack.i.bf16 %v817_v60, %v815_v59  ;;  %v779_v8 = vsel %vm750_vm14, %v3923_v45, %v778_v57  ;;  %v1034_v48 = vld [vmem:[%s4761_s3 + $0x300] sm:$0xff]  ;;  %v1035_v49 = vld [vmem:[%s4761_s3 + $0x308] sm:$0xff]  ;;  %v1005_v53 = vld [vmem:[%s4761_s3 + $0x218] sm:$0xff] }
 0x284   : > { %v781_v9 = vsel %vm750_vm14, %v776_v46, %v780_v61  ;;  %v862_v14 = vsel %vm838_vm15, %v860_v6, %v3939_v1  ;;  %v865_v15 = vsel %vm838_vm15, %v863_v7, %v864_v2  ;;  %v903_v23 = vsel %vm838_vm15, %v3939_v1, %v902_v10  ;;  %v746_v46 = vld [vmem:[#allocation3 + $0x20] sm:$0x1]  ;;  %v1052_v54 = vld [vmem:[%s4761_s3 + $0x390] sm:$0xff]  ;;  %v1023_v59 = vld [vmem:[%s4761_s3 + $0x2a8] sm:$0xff] }
 0x285   : > { %3266 = vrot.lane.b32.xlu1 %v3265_v55, %s3375_s14  ;;  %v3285_v18 = vpack.i.bf16 %v781_v9, %v779_v8  ;;  %v3280_v21 = vpack.i.bf16 %v865_v15, %v862_v14  ;;  %v905_v24 = vsel %vm838_vm15, %v864_v2, %v904_v11  ;;  %v898_v25 = vsel %vm838_vm15, %v896_v19, %v3939_v1  ;;  %v1053_v55 = vld [vmem:[%s4761_s3 + $0x398] sm:$0xff]  ;;  %v1036_v3 = vld [vmem:[%s4761_s3 + $0x310] sm:$0xff]  ;;  %v1007_v7 = vld [vmem:[%s4761_s3 + $0x228] sm:$0xff] }
 0x286   : > { %3261 = vrot.lane.b32.xlu0 %v3260_v58, %s3381_s16  ;;  %v901_v26 = vsel %vm838_vm15, %v899_v20, %v864_v2  ;;  %v866_v27 = vrot.slane %v852_v16, 2  ;;  %v868_v28 = vrot.slane %v853_v17, 2  ;;  %v3295_v29 = vpack.i.bf16 %v905_v24, %v903_v23  ;;  %v1022_v58 = vld [vmem:[%s4761_s3 + $0x2a0] sm:$0xff]  ;;  %v1037_v4 = vld [vmem:[%s4761_s3 + $0x318] sm:$0xff]  ;;  %v1055_v9 = vld [vmem:[%s4761_s3 + $0x3a8] sm:$0xff] }
 0x287   : > { %v3290_v30 = vpack.i.bf16 %v901_v26, %v898_v25  ;;  %v2974_v47 = vpack.c.bf16 %v1003_v38, %v1002_v36  ;;  %v2976_v52 = vpack.c.bf16 %v1021_v42, %v1020_v0  ;;  %v754_v57 = vrot.slane %v746_v46, 1  ;;  %v1054_v8 = vld [vmem:[%s4761_s3 + $0x3a0] sm:$0xff]  ;;  %v1024_v11 = vld [vmem:[%s4761_s3 + $0x2b0] sm:$0xff]  ;;  %v1009_v19 = vld [vmem:[%s4761_s3 + $0x238] sm:$0xff] }
 0x288   : > { %v867_v33 = vsel %vm838_vm15, %v3939_v1, %v866_v27  ;;  %v869_v34 = vsel %vm838_vm15, %v864_v2, %v868_v28  ;;  %v3006_v62 = vpack.c.bf16 %v1035_v49, %v1034_v48  ;;  %v2978_v63 = vpack.c.bf16 %v1005_v53, %v1004_v50  ;;  %v1038_v16 = vld [vmem:[%s4761_s3 + $0x320] sm:$0xff]  ;;  %v1008_v17 = vld [vmem:[%s4761_s3 + $0x230] sm:$0xff]  ;;  %v1027_v25 = vld [vmem:[%s4761_s3 + $0x2c8] sm:$0xff] }
 0x289   : > { %3276 = vrot.lane.b32.xlu1 %v3275_v5, %s3381_s16  ;;  %v3300_v35 = vpack.i.bf16 %v869_v34, %v867_v33  ;;  %v3008_v2 = vpack.c.bf16 %v1053_v55, %v1052_v54  ;;  %v1006_v5 = vld [vmem:[%s4761_s3 + $0x220] sm:$0xff]  ;;  %v755_v10 = vsel %vm750_vm14, %v3923_v45, %v754_v57  ;;  %v3010_v13 = vpack.c.bf16 %v1037_v4, %v1036_v3  ;;  %v1039_v45 = vld [vmem:[%s4761_s3 + $0x328] sm:$0xff]  ;;  %v1056_v20 = vld [vmem:[%s4761_s3 + $0x3b0] sm:$0xff] }
 0x28a   : > { %3271 = vrot.lane.b32.xlu0 %v3255_v44, %s3381_s16  ;;  %v2982_v14 = vpack.c.bf16 %v1007_v7, %v1006_v5  ;;  %v3012_v15 = vpack.c.bf16 %v1055_v9, %v1054_v8  ;;  %v1026_v24 = vld [vmem:[%s4761_s3 + $0x2c0] sm:$0xff]  ;;  %v3014_v28 = vpack.c.bf16 %v1039_v45, %v1038_v16  ;;  %v1040_v33 = vld [vmem:[%s4761_s3 + $0x330] sm:$0xff]  ;;  %v1041_v34 = vld [vmem:[%s4761_s3 + $0x338] sm:$0xff] }
 0x28b   : > { %v2988_v38 = vpack.c.bf16 %v1027_v25, %v1026_v24  ;;  %v1058_v0 = vld [vmem:[%s4761_s3 + $0x3c0] sm:$0xff]  ;;  %v1059_v42 = vld [vmem:[%s4761_s3 + $0x3c8] sm:$0xff]  ;;  %v1029_v46 = vld [vmem:[%s4761_s3 + $0x2d8] sm:$0xff]  ;;  %v3018_v49 = vpack.c.bf16 %v1041_v34, %v1040_v33 }
 0x28c   : > { %v1043_v53 = vld [vmem:[%s4761_s3 + $0x348] sm:$0xff]  ;;  %v1012_v54 = vld [vmem:[%s4761_s3 + $0x250] sm:$0xff]  ;;  %v1014_v7 = vld [vmem:[%s4761_s3 + $0x260] sm:$0xff] }
 0x28d   : > { %3286 = vrot.lane.b32.xlu1 %v3285_v18, %s3375_s14  ;;  %v2984_v18 = vpack.c.bf16 %v1025_v12, %v1024_v11  ;;  %v1060_v57 = vld [vmem:[%s4761_s3 + $0x3d0] sm:$0xff]  ;;  %v1062_v11 = vld [vmem:[%s4761_s3 + $0x3e0] sm:$0xff]  ;;  %v1063_v12 = vld [vmem:[%s4761_s3 + $0x3e8] sm:$0xff] }
 0x28e   : > { %3281 = vrot.lane.b32.xlu0 %v3280_v21, %s3375_s14  ;;  %v1057_v21 = vld [vmem:[%s4761_s3 + $0x3b8] sm:$0xff]  ;;  %v1066_v33 = vld [vmem:[%s4761_s3 + $0x400] sm:$0xff]  ;;  %v1067_v34 = vld [vmem:[%s4761_s3 + $0x408] sm:$0xff] }
 0x291   : > { %3296 = vrot.lane.b32.xlu1 %v3295_v29, %s3381_s16  ;;  %v2986_v29 = vpack.c.bf16 %v1009_v19, %v1008_v17  ;;  %v3028_v19 = vpack.c.bf16 %v1063_v12, %v1062_v11 }
 0x292   : > { %3291 = vrot.lane.b32.xlu0 %v3290_v30, %s3381_s16  ;;  %v3016_v30 = vpack.c.bf16 %v1057_v21, %v1056_v20  ;;  %v1046_v20 = vld [vmem:[%s4761_s3 + $0x360] sm:$0xff]  ;;  %v1047_v21 = vld [vmem:[%s4761_s3 + $0x368] sm:$0xff] }
 0x296   : > { %3301 = vrot.lane.b32.xlu0 %v3300_v35, %s3375_s14  ;;  %v1010_v35 = vld [vmem:[%s4761_s3 + $0x240] sm:$0xff] }
 0x2e7   : > { %v3247_v41 = vpop.permute.xlu1 %3246 }
 0x2e8   : > { %v3249_v43 = vunpack.i.h.bf16 %v3247_v41  ;;  %v3248_v44 = vunpack.i.l.bf16 %v3247_v41  ;;  %v1011_v41 = vld [vmem:[%s4761_s3 + $0x248] sm:$0xff] }
 0x2e9   : > { %v2990_v50 = vpack.c.bf16 %v1011_v41, %v1010_v35  ;;  %v3030_v35 = vpack.c.bf16 %v1047_v21, %v1046_v20  ;;  %v1048_v41 = vld [vmem:[%s4761_s3 + $0x370] sm:$0xff]  ;;  %v1081_v21 = vld [vmem:[%s4761_s3 + $0x478] sm:$0xff] }
 0x2ea   : > { %v715_v51 = vsel %vm714_vm0, %v3248_v44, %v3249_v43  ;;  %v1028_v44 = vld [vmem:[%s4761_s3 + $0x2d0] sm:$0xff] }
 0x2eb   : > { %v3252_v56 = vpop.permute.xlu1 %3251  ;;  %1146 = vmatprep.mubr.f32.mxu1 %v715_v51  ;;  %v3020_v51 = vpack.c.bf16 %v1059_v42, %v1058_v0  ;;  %v2992_v55 = vpack.c.bf16 %v1029_v46, %v1028_v44  ;;  %v1049_v0 = vld [vmem:[%s4761_s3 + $0x378] sm:$0xff]  ;;  %v3036_v44 = vpack.c.bf16 %v1067_v34, %v1066_v33  ;;  %v1068_v46 = vld [vmem:[%s4761_s3 + $0x410] sm:$0xff] }
 0x2ec   : > { %v3254_v60 = vunpack.i.h.bf16 %v3252_v56  ;;  %v3253_v61 = vunpack.i.l.bf16 %v3252_v56  ;;  %1147 = vmatmul.mubr.f32.vlgmr.msra.gmra.mrb[4].mxu1 %v3910_v22  ;;  %v2980_v22 = vpack.c.bf16 %v1023_v59, %v1022_v58  ;;  %v1013_v56 = vld [vmem:[%s4761_s3 + $0x258] sm:$0xff]  ;;  %v1080_v20 = vld [vmem:[%s4761_s3 + $0x470] sm:$0xff] }
 0x2ed   : > { %2975 = vmatpush3.bf16.msra.mxu1 %v2974_v47  ;;  %v1061_v58 = vld [vmem:[%s4761_s3 + $0x3d8] sm:$0xff]  ;;  %v2994_v4 = vpack.c.bf16 %v1013_v56, %v1012_v54 }
 0x2ee   : > { %v738_v6 = vsel %vm737_vm1, %v3253_v61, %v3254_v60  ;;  %2977 = vmatprep.subr.bf16.mxu1 %v2976_v52  ;;  %v1042_v52 = vld [vmem:[%s4761_s3 + $0x340] sm:$0xff]  ;;  %v1031_v61 = vld [vmem:[%s4761_s3 + $0x2e8] sm:$0xff]  ;;  %v3024_v5 = vpack.c.bf16 %v1061_v58, %v1060_v57 }
 0x2ef   : > { %1222 = vmatmul.mubr.f32.vlgmr.msra.gmra.mrb[6].mxu0 %v738_v6  ;;  %v1030_v60 = vld [vmem:[%s4761_s3 + $0x2e0] sm:$0xff]  ;;  %v3022_v3 = vpack.c.bf16 %v1043_v53, %v1042_v52  ;;  %v1044_v6 = vld [vmem:[%s4761_s3 + $0x350] sm:$0xff]  ;;  %v3034_v52 = vpack.c.bf16 %v1049_v0, %v1048_v41  ;;  %v832_v53 = vld [vmem:[#allocation3] sm:$0xfc] }
 0x2f0   : > { %3007 = vmatpush3.bf16.msra.mxu0 %v3006_v62  ;;  %1226 = vmatprep.mubr.f32.mxu0 %v755_v10  ;;  %v2996_v9 = vpack.c.bf16 %v1031_v61, %v1030_v60  ;;  %v1015_v10 = vld [vmem:[%s4761_s3 + $0x268] sm:$0xff]  ;;  %v1070_v60 = vld [vmem:[%s4761_s3 + $0x420] sm:$0xff] }
 0x2f1   : > { %2979 = vmatpush3.bf16.msra.mxu1 %v2978_v63  ;;  %3009 = vmatprep.subr.bf16.mxu0 %v3008_v2  ;;  %v1071_v61 = vld [vmem:[%s4761_s3 + $0x428] sm:$0xff] }
 0x2f2   : > { %2981 = vmatprep.subr.bf16.mxu1 %v2980_v22  ;;  %v1045_v22 = vld [vmem:[%s4761_s3 + $0x358] sm:$0xff] }
 0x2f3   : > { %v3026_v17 = vpack.c.bf16 %v1045_v22, %v1044_v6  ;;  %v3044_v6 = vpack.c.bf16 %v1071_v61, %v1070_v60 }
 0x2f4   : > { %v3257_v23 = vpop.permute.xlu0 %3256  ;;  %3011 = vmatpush3.bf16.msra.mxu0 %v3010_v13 }
 0x2f5   : > { %v3259_v26 = vunpack.i.h.bf16 %v3257_v23  ;;  %v3258_v27 = vunpack.i.l.bf16 %v3257_v23  ;;  %2983 = vmatpush3.bf16.msra.mxu1 %v2982_v14  ;;  %3013 = vmatprep.subr.bf16.mxu0 %v3012_v15  ;;  %v1032_v14 = vld [vmem:[%s4761_s3 + $0x2f0] sm:$0xff]  ;;  %v1033_v15 = vld [vmem:[%s4761_s3 + $0x2f8] sm:$0xff] }
 0x2f6   : > { %2985 = vmatprep.subr.bf16.mxu1 %v2984_v18  ;;  %v2998_v18 = vpack.c.bf16 %v1015_v10, %v1014_v7  ;;  %v1016_v23 = vld [vmem:[%s4761_s3 + $0x270] sm:$0xff] }
 0x2f7   : > { %v716_v36 = vsel %vm714_vm0, %v3258_v27, %v3259_v26  ;;  %v4104_v62 = vpop.permute.xlu1 %3266  ;;  %v3000_v26 = vpack.c.bf16 %v1033_v15, %v1032_v14  ;;  %v1017_v27 = vld [vmem:[%s4761_s3 + $0x278] sm:$0xff]  ;;  %v1075_v14 = vld [vmem:[%s4761_s3 + $0x448] sm:$0xff] }
 0x2f8   : > { %v3262_v43 = vpop.permute.xlu0 %3261  ;;  %1151 = vmatprep.mubr.f32.mxu1 %v716_v36  ;;  %3015 = vmatpush3.bf16.msra.mxu0 %v3014_v28  ;;  %v1064_v28 = vld [vmem:[%s4761_s3 + $0x3f0] sm:$0xff]  ;;  %v3002_v36 = vpack.c.bf16 %v1017_v27, %v1016_v23  ;;  %v3269_v42 = vunpack.i.h.bf16 %v4104_v62  ;;  %v3064_v23 = vpack.c.bf16 %v1081_v21, %v1080_v20 }
 0x2f9   : > { %v3264_v47 = vunpack.i.h.bf16 %v3262_v43  ;;  %v3263_v48 = vunpack.i.l.bf16 %v3262_v43  ;;  %1152 = vmatmul.mubr.f32.gmra.mrb[6].mxu1 %v3919_v37  ;;  %3017 = vmatprep.subr.bf16.mxu0 %v3016_v30  ;;  %v3268_v43 = vunpack.i.l.bf16 %v4104_v62 }
 0x2fa   : > { %2987 = vmatpush3.bf16.msra.mxu1 %v2986_v29  ;;  %v1065_v29 = vld [vmem:[%s4761_s3 + $0x3f8] sm:$0xff] }
 0x2fb   : > { %2989 = vmatprep.subr.bf16.mxu1 %v2988_v38  ;;  %v826_v37 = vsel %vm737_vm1, %v3263_v48, %v3264_v47  ;;  %v3277_v24 = vpop.permute.xlu1 %3276  ;;  %v3032_v38 = vpack.c.bf16 %v1065_v29, %v1064_v28  ;;  %v1069_v47 = vld [vmem:[%s4761_s3 + $0x418] sm:$0xff]  ;;  %v790_v54 = vsel %vm714_vm0, %v3268_v43, %v3269_v42 }
 0x2fc   : > { %v3272_v59 = vpop.permute.xlu0 %3271  ;;  %1296 = vmatprep.mubr.f32.mxu1 %v826_v37  ;;  %3019 = vmatpush3.bf16.msra.mxu0 %v3018_v49  ;;  %v3279_v48 = vunpack.i.h.bf16 %v3277_v24  ;;  %v3278_v49 = vunpack.i.l.bf16 %v3277_v24  ;;  %v3040_v37 = vpack.c.bf16 %v1069_v47, %v1068_v46 }
 0x2fd   : > { %v3274_v63 = vunpack.i.h.bf16 %v3272_v59  ;;  %v3273_v2 = vunpack.i.l.bf16 %v3272_v59  ;;  %3021 = vmatprep.subr.bf16.mxu0 %v3020_v51  ;;  %v834_v59 = vld [vmem:[#allocation3 + $0x20] sm:$0x3] }
 0x2fe   : > { %2991 = vmatpush3.bf16.msra.mxu1 %v2990_v50 }
 0x2ff   : > { %2993 = vmatprep.subr.bf16.mxu1 %v2992_v55  ;;  %v739_v8 = vsel %vm737_vm1, %v3273_v2, %v3274_v63  ;;  %v3287_v50 = vpop.permute.xlu1 %3286  ;;  %v827_v2 = vsel %vm737_vm1, %v3278_v49, %v3279_v48 }
 0x300   : > { %v3282_v13 = vpop.permute.xlu0 %3281  ;;  %1227 = vmatmul.mubr.f32.gmra.mrb[8].mxu0 %v739_v8  ;;  %v3289_v55 = vunpack.i.h.bf16 %v3287_v50  ;;  %v3288_v56 = vunpack.i.l.bf16 %v3287_v50  ;;  %v1072_v8 = vld [vmem:[%s4761_s3 + $0x430] sm:$0xff] }
 0x301   : > { %3023 = vmatpush3.bf16.msra.mxu0 %v3022_v3  ;;  %v3284_v16 = vunpack.i.h.bf16 %v3282_v13  ;;  %v3283_v45 = vunpack.i.l.bf16 %v3282_v13  ;;  %v839_v3 = vrot.slane %v832_v53, 2  ;;  %v1074_v13 = vld [vmem:[%s4761_s3 + $0x440] sm:$0xff] }
 0x302   : > { %2995 = vmatpush3.bf16.msra.mxu1 %v2994_v4  ;;  %3025 = vmatprep.subr.bf16.mxu0 %v3024_v5  ;;  %v842_v5 = vrot.slane %v834_v59, 2  ;;  %v791_v22 = vsel %vm714_vm0, %v3288_v56, %v3289_v55  ;;  %v3052_v15 = vpack.c.bf16 %v1075_v14, %v1074_v13 }
 0x303   : > { %2997 = vmatprep.subr.bf16.mxu1 %v2996_v9  ;;  %v878_v25 = vsel %vm714_vm0, %v3283_v45, %v3284_v16  ;;  %v841_v4 = vsel %vm838_vm15, %v839_v3, %v3939_v1  ;;  %v1073_v9 = vld [vmem:[%s4761_s3 + $0x438] sm:$0xff]  ;;  %v1076_v16 = vld [vmem:[%s4761_s3 + $0x450] sm:$0xff]  ;;  %v3297_v24 = vpop.permute.xlu1 %3296 }
 0x304   : > { %v3292_v30 = vpop.permute.xlu0 %3291  ;;  %1371 = vmatprep.mubr.f32.mxu0 %v878_v25  ;;  %v843_v11 = vsel %vm838_vm15, %v3939_v1, %v842_v5  ;;  %v3048_v12 = vpack.c.bf16 %v1073_v9, %v1072_v8  ;;  %v1077_v1 = vld [vmem:[%s4761_s3 + $0x458] sm:$0xff]  ;;  %v3299_v25 = vunpack.i.h.bf16 %v3297_v24  ;;  %v1735_v8 = vld [vmem:[%s4762_s4 + $0x80] sm:$0xff] }
 0x305   : > { %3027 = vmatpush3.bf16.msra.mxu0 %v3026_v17  ;;  %v3294_v62 = vunpack.i.h.bf16 %v3292_v30  ;;  %v3293_v63 = vunpack.i.l.bf16 %v3292_v30  ;;  %v3056_v45 = vpack.c.bf16 %v1077_v1, %v1076_v16  ;;  %v1078_v17 = vld [vmem:[%s4761_s3 + $0x460] sm:$0xff]  ;;  %v1720_v16 = vld [vmem:[%s4762_s4 + $0x8] sm:$0xff]  ;;  %v1769_v1 = vld [vmem:[%s4762_s4 + $0x190] sm:$0xff] }
 0x306   : > { %2999 = vmatpush3.bf16.msra.mxu1 %v2998_v18  ;;  %3029 = vmatprep.subr.bf16.mxu0 %v3028_v19  ;;  %v1079_v18 = vld [vmem:[%s4761_s3 + $0x468] sm:$0xff] }
 0x307   : > { %3001 = vmatprep.subr.bf16.mxu1 %v3000_v26  ;;  %v914_v10 = vsel %vm737_vm1, %v3293_v63, %v3294_v62  ;;  %v3060_v19 = vpack.c.bf16 %v1079_v18, %v1078_v17  ;;  %v3298_v26 = vunpack.i.l.bf16 %v3297_v24  ;;  %v1770_v17 = vld [vmem:[%s4762_s4 + $0x198] sm:$0xff]  ;;  %v1737_v18 = vld [vmem:[%s4762_s4 + $0x90] sm:$0xff] }
 0x308   : > { %v3302_v51 = vpop.permute.xlu0 %3301  ;;  %v3104_v20 = vpack.c.bf16 %v1770_v17, %v1769_v1  ;;  %v1754_v24 = vld [vmem:[%s4762_s4 + $0x118] sm:$0xff]  ;;  %v1780_v1 = vld [vmem:[%s4762_s4 + $0x1e8] sm:$0xff] }
 0x309   : > { %3031 = vmatpush3.bf16.msra.mxu0 %v3030_v35  ;;  %v3304_v57 = vunpack.i.h.bf16 %v3302_v51  ;;  %v3303_v58 = vunpack.i.l.bf16 %v3302_v51  ;;  %v915_v27 = vsel %vm737_vm1, %v3298_v26, %v3299_v25  ;;  %v1721_v25 = vld [vmem:[%s4762_s4 + $0x10] sm:$0xff]  ;;  %v1748_v17 = vld [vmem:[%s4762_s4 + $0xe8] sm:$0xff] }
 0x30a   : > { %3003 = vmatpush3.bf16.msra.mxu1 %v3002_v36  ;;  %3033 = vmatprep.subr.bf16.mxu0 %v3032_v38 }
 0x30b   : > { %3037 = vmatprep.subr.bf16.mxu1 %v3036_v44  ;;  %v879_v7 = vsel %vm714_vm0, %v3303_v58, %v3304_v57 }
 0x30d   : > { %1297 = vmatmul.mubr.f32.vlgmr.msra.gmra.mrb[8].mxu1 %v790_v54  ;;  %3035 = vmatpush3.bf16.msra.mxu0 %v3034_v52 }
 0x30e   : > { %1301 = vmatprep.mubr.f32.mxu1 %v827_v2  ;;  %3039 = vmatpush3.bf16.msra.mxu1 %v3036_v44 }
 0x30f   : > { %3041 = vmatprep.subr.bf16.mxu1 %v3040_v37 }
 0x310   : > { %1372 = vmatmul.mubr.f32.vlgmr.msra.gmra.mrb[10].mxu0 %v841_v4 }
 0x311   : > { %1302 = vmatmul.mubr.f32.gmra.mrb[10].mxu1 %v791_v22  ;;  %1376 = vmatprep.mubr.f32.mxu0 %v879_v7  ;;  %v1767_v22 = vld [vmem:[%s4762_s4 + $0x180] sm:$0xff]  ;;  %v1768_v7 = vld [vmem:[%s4762_s4 + $0x188] sm:$0xff] }
 0x312   : > { %3043 = vmatpush3.bf16.msra.mxu1 %v3040_v37  ;;  %2790 = vmatprep.mubr.f32.mxu1 %v914_v10  ;;  %v3100_v9 = vpack.c.bf16 %v1768_v7, %v1767_v22  ;;  %v1736_v10 = vld [vmem:[%s4762_s4 + $0x88] sm:$0xff]  ;;  %v1745_v22 = vld [vmem:[%s4762_s4 + $0xd0] sm:$0xff]  ;;  %v1746_v7 = vld [vmem:[%s4762_s4 + $0xd8] sm:$0xff] }
 0x313   : > { %3045 = vmatprep.subr.bf16.mxu1 %v3044_v6  ;;  %v3068_v13 = vpack.c.bf16 %v1736_v10, %v1735_v8 }
 0x314   : > { %1377 = vmatmul.mubr.f32.gmra.mrb[12].mxu0 %v843_v11  ;;  %v1751_v11 = vld [vmem:[%s4762_s4 + $0x100] sm:$0xff] }
 0x315   : > { %3069 = vmatprep.subr.bf16.mxu0 %v3068_v13  ;;  %v1729_v13 = vld [vmem:[%s4762_s4 + $0x50] sm:$0xff] }
 0x316   : > { %3047 = vmatpush3.bf16.msra.mxu1 %v3044_v6 }
 0x317   : > { %3049 = vmatprep.subr.bf16.mxu1 %v3048_v12 }
 0x31a   : > { %3051 = vmatpush3.bf16.msra.mxu1 %v3048_v12  ;;  %v1752_v12 = vld [vmem:[%s4762_s4 + $0x108] sm:$0xff] }
 0x31b   : > { %3053 = vmatprep.subr.bf16.mxu1 %v3052_v15  ;;  %v3102_v14 = vpack.c.bf16 %v1752_v12, %v1751_v11  ;;  %v1761_v11 = vld [vmem:[%s4762_s4 + $0x150] sm:$0xff]  ;;  %v1762_v12 = vld [vmem:[%s4762_s4 + $0x158] sm:$0xff] }
 0x31e   : > { %3055 = vmatpush3.bf16.msra.mxu1 %v3052_v15  ;;  %v1719_v15 = vld [vmem:[%s4762_s4] sm:$0xff] }
 0x31f   : > { %3057 = vmatprep.subr.bf16.mxu1 %v3056_v45 }
 0x322   : > { %3059 = vmatpush3.bf16.msra.mxu1 %v3056_v45  ;;  %v3070_v45 = vpack.c.bf16 %v1720_v16, %v1719_v15  ;;  %v1730_v15 = vld [vmem:[%s4762_s4 + $0x58] sm:$0xff]  ;;  %v1779_v16 = vld [vmem:[%s4762_s4 + $0x1e0] sm:$0xff] }
 0x323   : > { %3061 = vmatprep.subr.bf16.mxu1 %v3060_v19 }
 0x324   : > { %3071 = vmatpush3.bf16.msra.mxu0 %v3070_v45  ;;  %v1747_v45 = vld [vmem:[%s4762_s4 + $0xe0] sm:$0xff] }
 0x326   : > { %3063 = vmatpush3.bf16.msra.mxu1 %v3060_v19  ;;  %v1738_v19 = vld [vmem:[%s4762_s4 + $0x98] sm:$0xff] }
 0x327   : > { %3065 = vmatprep.subr.bf16.mxu1 %v3064_v23  ;;  %v3072_v21 = vpack.c.bf16 %v1738_v19, %v1737_v18  ;;  %v3122_v18 = vpack.c.bf16 %v1762_v12, %v1761_v11  ;;  %v3090_v19 = vpack.c.bf16 %v1730_v15, %v1729_v13 }
 0x329   : > { %3073 = vmatprep.subr.bf16.mxu0 %v3072_v21  ;;  %v1763_v21 = vld [vmem:[%s4762_s4 + $0x160] sm:$0xff] }
 0x32a   : > { %3067 = vmatpush3.bf16.msra.mxu1 %v3064_v23  ;;  %v1753_v23 = vld [vmem:[%s4762_s4 + $0x110] sm:$0xff] }
 0x32b   : > { %3101 = vmatprep.subr.bf16.mxu1 %v3100_v9  ;;  %v3106_v26 = vpack.c.bf16 %v1754_v24, %v1753_v23  ;;  %v1764_v23 = vld [vmem:[%s4762_s4 + $0x168] sm:$0xff]  ;;  %v1731_v24 = vld [vmem:[%s4762_s4 + $0x60] sm:$0xff] }
 0x32d   : > { %2791 = vmatmul.mubr.f32.vlgmr.msra.gmra.mrb[12].mxu1 %v915_v27  ;;  %v1722_v27 = vld [vmem:[%s4762_s4 + $0x18] sm:$0xff] }
 0x32e   : > { %3103 = vmatpush3.bf16.msra.mxu1 %v3102_v14  ;;  %v3088_v14 = vpack.c.bf16 %v1746_v7, %v1745_v22 }
 0x32f   : > { %3105 = vmatprep.subr.bf16.mxu1 %v3104_v20  ;;  %v3124_v20 = vpack.c.bf16 %v1780_v1, %v1779_v16 }
 0x332   : > { %3107 = vmatpush3.bf16.msra.mxu1 %v3106_v26  ;;  %v1732_v26 = vld [vmem:[%s4762_s4 + $0x68] sm:$0xff] }
 0x3bf   : > { %v2431_v28 = vpop.f32.mrb[4].mxu1 }
 0x3c0   : > { %v2432_v29 = vpop.f32.mrb[5].mxu1 }
 0x3c1   : > { %v2433_v30 = vadd.f32 %v2432_v29, %v2431_v28  ;;  %v1771_v28 = vld [vmem:[%s4762_s4 + $0x1a0] sm:$0xff]  ;;  %v1772_v29 = vld [vmem:[%s4762_s4 + $0x1a8] sm:$0xff] }
 0x3c2   : > { %v2469_v33 = vpop.f32.mrb[6].mxu0 }
 0x3c3   : > { %v1149_v34 = vadd.f32 %v2433_v30, %v665_v32  ;;  %v2470_v35 = vpop.f32.mrb[7].mxu0  ;;  %v3074_v30 = vpack.c.bf16 %v1722_v27, %v1721_v25  ;;  %v3092_v25 = vpack.c.bf16 %v1748_v17, %v1747_v45  ;;  %v1781_v27 = vld [vmem:[%s4762_s4 + $0x1f0] sm:$0xff] }
 0x3c4   : > { %v2471_v36 = vadd.f32 %v2470_v35, %v2469_v33  ;;  %v3108_v33 = vpack.c.bf16 %v1772_v29, %v1771_v28  ;;  %v1740_v35 = vld [vmem:[%s4762_s4 + $0xa8] sm:$0xff]  ;;  %v1782_v28 = vld [vmem:[%s4762_s4 + $0x1f8] sm:$0xff]  ;;  %v1749_v29 = vld [vmem:[%s4762_s4 + $0xf0] sm:$0xff] }
 0x3c5   : > { %3075 = vmatpush3.bf16.msra.mxu0 %v3074_v30  ;;  %v1750_v30 = vld [vmem:[%s4762_s4 + $0xf8] sm:$0xff] }
 0x3c6   : > { %v1224_v38 = vadd.f32 %v2471_v36, %v1149_v34  ;;  %v1739_v34 = vld [vmem:[%s4762_s4 + $0xa0] sm:$0xff]  ;;  %3109 = vmatprep.subr.bf16.mxu1 %v3108_v33  ;;  %v3126_v33 = vpack.c.bf16 %v1764_v23, %v1763_v21 }
 0x3c7   : > { %v1755_v36 = vld [vmem:[%s4762_s4 + $0x120] sm:$0xff] }
 0x3cc   : > { %v2434_v41 = vpop.f32.mrb[6].mxu1 }
 0x3cd   : > { %v2435_v0 = vpop.f32.mrb[7].mxu1 }
 0x3ce   : > { %v2436_v42 = vadd.f32 %v2435_v0, %v2434_v41  ;;  %v1756_v41 = vld [vmem:[%s4762_s4 + $0x128] sm:$0xff]  ;;  %v1723_v0 = vld [vmem:[%s4762_s4 + $0x20] sm:$0xff] }
 0x3d0   : > { %v1154_v46 = vadd.f32 %v2436_v42, %v666_v40  ;;  %v1724_v42 = vld [vmem:[%s4762_s4 + $0x28] sm:$0xff] }
 0x3d3   : > { %v2472_v43 = vpop.f32.mrb[8].mxu0 }
 0x3d4   : > { %v2473_v44 = vpop.f32.mrb[9].mxu0 }
 0x3d5   : > { %v2474_v47 = vadd.f32 %v2473_v44, %v2472_v43  ;;  %v3110_v43 = vpack.c.bf16 %v1756_v41, %v1755_v36  ;;  %v1773_v44 = vld [vmem:[%s4762_s4 + $0x1b0] sm:$0xff]  ;;  %v3096_v41 = vpack.c.bf16 %v1750_v30, %v1749_v29 }
 0x3d6   : > { %v1765_v36 = vld [vmem:[%s4762_s4 + $0x170] sm:$0xff] }
 0x3d7   : > { %v1229_v48 = vadd.f32 %v2474_v47, %v1154_v46  ;;  %v1774_v46 = vld [vmem:[%s4762_s4 + $0x1b8] sm:$0xff]  ;;  %v1741_v47 = vld [vmem:[%s4762_s4 + $0xb0] sm:$0xff]  ;;  %3111 = vmatpush3.bf16.msra.mxu1 %v3110_v43 }
 0x3d8   : > { %v1734_v43 = vld [vmem:[%s4762_s4 + $0x78] sm:$0xff] }
 0x3e0   : > { %v2507_v49 = vpop.f32.mrb[8].mxu1 }
 0x3e1   : > { %v2508_v50 = vpop.f32.mrb[9].mxu1 }
 0x3e2   : > { %v2509_v51 = vadd.f32 %v2508_v50, %v2507_v49  ;;  %v3112_v49 = vpack.c.bf16 %v1774_v46, %v1773_v44  ;;  %v1742_v50 = vld [vmem:[%s4762_s4 + $0xb8] sm:$0xff]  ;;  %v1831_v44 = vld [vmem:[%s4762_s4 + $0x380] sm:$0xff] }
 0x3e3   : > { %v2545_v52 = vpop.f32.mrb[10].mxu0 }
 0x3e4   : > { %v1299_v53 = vadd.f32 %v2509_v51, %v1224_v38  ;;  %v2510_v31 = vpop.f32.mrb[10].mxu1  ;;  %v2546_v32 = vpop.f32.mrb[11].mxu0  ;;  %v3076_v38 = vpack.c.bf16 %v1740_v35, %v1739_v34  ;;  %v1757_v51 = vld [vmem:[%s4762_s4 + $0x130] sm:$0xff]  ;;  %3113 = vmatprep.subr.bf16.mxu1 %v3112_v49  ;;  %v3094_v34 = vpack.c.bf16 %v1732_v26, %v1731_v24  ;;  %v3128_v35 = vpack.c.bf16 %v1782_v28, %v1781_v27  ;;  %v1800_v49 = vld [vmem:[%s4762_s4 + $0x288] sm:$0xff] }
 0x3e5   : > { %v2547_v54 = vadd.f32 %v2546_v32, %v2545_v52  ;;  %v2511_v37 = vpop.f32.mrb[11].mxu1  ;;  %v1758_v52 = vld [vmem:[%s4762_s4 + $0x138] sm:$0xff] }
 0x3e6   : > { %v2512_v55 = vadd.f32 %v2511_v37, %v2510_v31  ;;  %3077 = vmatprep.subr.bf16.mxu0 %v3076_v38  ;;  %v1725_v31 = vld [vmem:[%s4762_s4 + $0x30] sm:$0xff]  ;;  %v1726_v32 = vld [vmem:[%s4762_s4 + $0x38] sm:$0xff]  ;;  %v1776_v37 = vld [vmem:[%s4762_s4 + $0x1c8] sm:$0xff] }
 0x3e7   : > { %v2548_v56 = vpop.f32.mrb[12].mxu0  ;;  %v1374_v57 = vadd.f32 %v2547_v54, %v1299_v53  ;;  %v3080_v53 = vpack.c.bf16 %v1742_v50, %v1741_v47  ;;  %v1775_v54 = vld [vmem:[%s4762_s4 + $0x1c0] sm:$0xff]  ;;  %v1766_v38 = vld [vmem:[%s4762_s4 + $0x178] sm:$0xff]  ;;  %v1832_v47 = vld [vmem:[%s4762_s4 + $0x388] sm:$0xff] }
 0x3e8   : > { %v1304_v58 = vadd.f32 %v2512_v55, %v1229_v48  ;;  %v2549_v59 = vpop.f32.mrb[13].mxu0  ;;  %v3078_v48 = vpack.c.bf16 %v1724_v42, %v1723_v0  ;;  %v1743_v55 = vld [vmem:[%s4762_s4 + $0xc0] sm:$0xff]  ;;  %v3130_v0 = vpack.c.bf16 %v1766_v38, %v1765_v36  ;;  %v1733_v42 = vld [vmem:[%s4762_s4 + $0x70] sm:$0xff] }
 0x3e9   : > { %v2550_v60 = vadd.f32 %v2549_v59, %v2548_v56  ;;  %v1744_v56 = vld [vmem:[%s4762_s4 + $0xc8] sm:$0xff]  ;;  %v3116_v59 = vpack.c.bf16 %v1776_v37, %v1775_v54  ;;  %v3098_v46 = vpack.c.bf16 %v1734_v43, %v1733_v42 }
 0x3ea   : > { %3079 = vmatpush3.bf16.msra.mxu0 %v3078_v48  ;;  %v1799_v48 = vld [vmem:[%s4762_s4 + $0x280] sm:$0xff] }
 0x3eb   : > { %v1379_v61 = vadd.f32 %v2550_v60, %v1304_v58  ;;  %v3082_v58 = vpack.c.bf16 %v1726_v32, %v1725_v31  ;;  %v1759_v60 = vld [vmem:[%s4762_s4 + $0x140] sm:$0xff]  ;;  %3081 = vmatprep.subr.bf16.mxu0 %v3080_v53 }
 0x3ee   : > { %3083 = vmatpush3.bf16.msra.mxu0 %v3082_v58 }
 0x400   : > { %v2792_v39 = vpop.f32.mrb[12].mxu1 }
 0x401   : > { %v4220_v40 = vadd.f32 %v2792_v39, %v1379_v61  ;;  %v1448_v62 = vpop.f32.mrb[13].mxu1  ;;  %v1760_v61 = vld [vmem:[%s4762_s4 + $0x148] sm:$0xff]  ;;  %v1727_v39 = vld [vmem:[%s4762_s4 + $0x40] sm:$0xff] }
 0x402   : > { %v4222_v63 = vadd.f32 %v1448_v62, %v1374_v57  ;;  %v3114_v57 = vpack.c.bf16 %v1758_v52, %v1757_v51  ;;  %v3084_v62 = vpack.c.bf16 %v1744_v56, %v1743_v55  ;;  %v3118_v8 = vpack.c.bf16 %v1760_v61, %v1759_v60 }
 0x403   : > { %v1458_v2 = vmax.f32 %v4220_v40, 0.0  ;;  %v3164_v51 = vpack.c.bf16 %v1832_v47, %v1831_v44  ;;  %v3132_v52 = vpack.c.bf16 %v1800_v49, %v1799_v48 }
 0x404   : > { %v1457_v3 = vmax.f32 %v4222_v63, 0.0  ;;  %3115 = vmatpush3.bf16.msra.mxu1 %v3114_v57  ;;  %3085 = vmatprep.subr.bf16.mxu0 %v3084_v62 }
 0x405   : > { %v1462_v4 = vrot.slane %v1458_v2, 7  ;;  %3117 = vmatprep.subr.bf16.mxu1 %v3116_v59 }
 0x406   : > { %v1461_v5 = vrot.slane %v1457_v3, 7 }
 0x408   : > { %1464 = vrot.lane.b32.xlu1 %v1461_v5, %s3380_s23  ;;  %v1463_v6 = vsel %vm669_vm7, %v1461_v5, %v1462_v4  ;;  %v1777_v5 = vld [vmem:[%s4762_s4 + $0x1d0] sm:$0xff]  ;;  %3119 = vmatpush3.bf16.msra.mxu1 %v3118_v8 }
 0x409   : > { %1466 = vrot.lane.b32.xlu0 %v1463_v6, %s3380_s23  ;;  %v1778_v6 = vld [vmem:[%s4762_s4 + $0x1d8] sm:$0xff] }
 0x40a   : > { %v3120_v10 = vpack.c.bf16 %v1778_v6, %v1777_v5 }
 0x40c   : > { %1468 = vrot.lane.b32.xlu1 %v1462_v4, %s3380_s23  ;;  %v1728_v4 = vld [vmem:[%s4762_s4 + $0x48] sm:$0xff]  ;;  %3121 = vmatprep.subr.bf16.mxu1 %v3120_v10 }
 0x40d   : > { %v3086_v9 = vpack.c.bf16 %v1728_v4, %v1727_v39  ;;  %3123 = vmatpush3.bf16.msra.mxu1 %v3122_v18 }
 0x40e   : > { %3125 = vmatprep.subr.bf16.mxu1 %v3124_v20 }
 0x40f   : > { %3087 = vmatpush3.bf16.msra.mxu0 %v3086_v9 }
 0x410   : > { %3089 = vmatprep.subr.bf16.mxu0 %v3088_v14 }
 0x411   : > { %3127 = vmatpush3.bf16.msra.mxu1 %v3126_v33 }
 0x412   : > { %3129 = vmatprep.subr.bf16.mxu1 %v3128_v35 }
 0x413   : > { %3091 = vmatpush3.bf16.msra.mxu0 %v3090_v19 }
 0x414   : > { %3093 = vmatprep.subr.bf16.mxu0 %v3092_v25 }
 0x415   : > { %3131 = vmatpush3.bf16.msra.mxu1 %v3130_v0 }
 0x416   : > { %3165 = vmatprep.subr.bf16.mxu1 %v3164_v51 }
 0x417   : > { %3095 = vmatpush3.bf16.msra.mxu0 %v3094_v34 }
 0x418   : > { %3097 = vmatprep.subr.bf16.mxu0 %v3096_v41 }
 0x41b   : > { %3099 = vmatpush3.bf16.msra.mxu0 %v3098_v46 }
 0x41c   : > { %3133 = vmatprep.subr.bf16.mxu0 %v3132_v52 }
 0x47a   : > { %v1465_v50 = vpop.permute.xlu1 %1464 }
 0x47b   : > { %1473 = vst.msk [vmem:[#allocation3] sm:$0xfe] %vm682_vm8, %v1465_v50  ;;  %v1467_v53 = vpop.permute.xlu0 %1466 }
 0x47c   : > { %1474 = vst.msk [vmem:[#allocation3 + $0x8] sm:$0xfe] %vm684_vm9, %v1465_v50 }
 0x47d   : > { %1475 = vst.msk [vmem:[#allocation3 + $0x10] sm:$0xff] %vm686_vm12, %v1467_v53 }
 0x47e   : > { %1476 = vst.msk [vmem:[#allocation3 + $0x18] sm:$0xff] %vm688_vm13, %v1467_v53  ;;  %v1469_v31 = vpop.permute.xlu1 %1468 }
 0x47f   : > { %1477 = vst.msk [vmem:[#allocation3 + $0x20] sm:$0x1] %vm690_vm10, %v1469_v31 }
 0x480   : > { %1478 = vst.msk [vmem:[#allocation3 + $0x28] sm:$0x1] %vm692_vm11, %v1469_v31 }
 0x482   : > { %v4444_v32 = vld [vmem:[#allocation3] sm:$0xff] }
 0x483   : > { %v1506_v54 = vld [vmem:[#allocation3 + $0x8] sm:$0xff]  ;;  %v1527_v37 = vld [vmem:[#allocation3] sm:$0xfe] }
 0x484   : > { %v3310_v55 = vpack.i.bf16 %v1506_v54, %v4444_v32  ;;  %v4447_v56 = vld [vmem:[#allocation3 + $0x10] sm:$0xff]  ;;  %v1533_v57 = vrot.slane %v1527_v37, 1  ;;  %v1578_v58 = vld [vmem:[#allocation3] sm:$0xfe]  ;;  %v1579_v59 = vld [vmem:[#allocation3 + $0x8] sm:$0xfe] }
 0x485   : > { %v4450_v60 = vrot.slane %v4447_v56, 1  ;;  %v1581_v61 = vld [vmem:[#allocation3 + $0x18] sm:$0xff]  ;;  %v1590_v39 = vrot.slane %v1578_v58, 1  ;;  %v1593_v62 = vrot.slane %v1579_v59, 1  ;;  %v1542_v4 = vld [vmem:[#allocation3] sm:$0xfe] }
 0x486   : > { %3311 = vrot.lane.b32.xlu1 %v3310_v55, %s3381_s16  ;;  %3306 = vrot.lane.b32.xlu0 %v3310_v55, %s3375_s14  ;;  %v1594_v5 = vrot.slane %v1581_v61, 1  ;;  %v3315_v6 = vpack.i.bf16 %v1581_v61, %v4447_v56  ;;  %v1543_v22 = vld [vmem:[#allocation3 + $0x8] sm:$0xfe]  ;;  %v1554_v7 = vrot.slane %v1542_v4, 1  ;;  %v1629_v8 = vld [vmem:[#allocation3] sm:$0xfc] }
 0x487   : > { %v1535_v9 = vsel %vm750_vm14, %v1533_v57, %v4450_v60  ;;  %v1592_v10 = vsel %vm750_vm14, %v1590_v39, %v4450_v60  ;;  %v1557_v11 = vrot.slane %v1543_v22, 1  ;;  %v1582_v12 = vld [vmem:[#allocation3 + $0x20] sm:$0x1]  ;;  %v1583_v13 = vld [vmem:[#allocation3 + $0x28] sm:$0x1]  ;;  %v1641_v14 = vrot.slane %v1629_v8, 2 }
 0x488   : > { %2002 = vmatprep.mubr.f32.mxu1 %v1535_v9  ;;  %v1595_v15 = vsel %vm750_vm14, %v1593_v62, %v1594_v5  ;;  %v1556_v16 = vsel %vm750_vm14, %v1554_v7, %v4450_v60  ;;  %v1596_v1 = vrot.slane %v1582_v12, 1  ;;  %v1598_v45 = vrot.slane %v1583_v13, 1  ;;  %v1630_v17 = vld [vmem:[#allocation3 + $0x8] sm:$0xfc]  ;;  %v1546_v24 = vld [vmem:[#allocation3 + $0x20] sm:$0x1] }
 0x489   : > { %v3320_v18 = vpack.i.bf16 %v1595_v15, %v1592_v10  ;;  %v1559_v19 = vsel %vm750_vm14, %v1557_v11, %v1594_v5  ;;  %v4464_v20 = vrot.slane %v4447_v56, 2  ;;  %v1644_v21 = vrot.slane %v1630_v17, 2  ;;  %v1547_v25 = vld [vmem:[#allocation3 + $0x28] sm:$0x1]  ;;  %v1633_v26 = vld [vmem:[#allocation3 + $0x20] sm:$0x3] }
 0x48a   : > { %3316 = vrot.lane.b32.xlu0 %v3315_v6, %s3375_s14  ;;  %v1645_v23 = vrot.slane %v1581_v61, 2  ;;  %v1634_v27 = vld [vmem:[#allocation3 + $0x28] sm:$0x3]  ;;  %v3325_v28 = vpack.i.bf16 %v1559_v19, %v1556_v16  ;;  %v1597_v29 = vsel %vm750_vm14, %v4450_v60, %v1596_v1  ;;  %v1599_v30 = vsel %vm750_vm14, %v1594_v5, %v1598_v45  ;;  %v1665_v0 = vld [vmem:[#allocation3] sm:$0xfc]  ;;  %v1784_v7 = vld [vmem:[%s4762_s4 + $0x208] sm:$0xff] }
 0x48b   : > { %3321 = vrot.lane.b32.xlu1 %v3320_v18, %s3381_s16  ;;  %v1643_v33 = vsel %vm838_vm15, %v1641_v14, %v4464_v20  ;;  %v1560_v35 = vrot.slane %v1546_v24, 1  ;;  %v1562_v36 = vrot.slane %v1547_v25, 1  ;;  %v1647_v38 = vrot.slane %v1633_v26, 2  ;;  %v1666_v42 = vld [vmem:[#allocation3 + $0x8] sm:$0xfc]  ;;  %v1833_v8 = vld [vmem:[%s4762_s4 + $0x390] sm:$0xff] }
 0x48c   : > { %v1646_v34 = vsel %vm838_vm15, %v1644_v21, %v1645_v23  ;;  %v1649_v41 = vrot.slane %v1634_v27, 2  ;;  %v1669_v43 = vld [vmem:[#allocation3 + $0x20] sm:$0x3]  ;;  %v1670_v44 = vld [vmem:[#allocation3 + $0x28] sm:$0x3]  ;;  %v3340_v46 = vpack.i.bf16 %v1599_v30, %v1597_v29  ;;  %v1677_v50 = vrot.slane %v1665_v0, 2 }
 0x48d   : > { %v3335_v47 = vpack.i.bf16 %v1646_v34, %v1643_v33  ;;  %v1561_v48 = vsel %vm750_vm14, %v4450_v60, %v1560_v35  ;;  %v1563_v49 = vsel %vm750_vm14, %v1594_v5, %v1562_v36  ;;  %v1680_v51 = vrot.slane %v1666_v42, 2  ;;  %v1815_v4 = vld [vmem:[%s4762_s4 + $0x300] sm:$0xff]  ;;  %v1816_v5 = vld [vmem:[%s4762_s4 + $0x308] sm:$0xff]  ;;  %v1834_v13 = vld [vmem:[%s4762_s4 + $0x398] sm:$0xff] }
 0x48e   : > { %3326 = vrot.lane.b32.xlu0 %v3325_v28, %s3375_s14  ;;  %v1648_v52 = vsel %vm838_vm15, %v4464_v20, %v1647_v38  ;;  %v1650_v53 = vsel %vm838_vm15, %v1645_v23, %v1649_v41  ;;  %v1683_v31 = vrot.slane %v1669_v43, 2  ;;  %v1685_v54 = vrot.slane %v1670_v44, 2  ;;  %v1783_v22 = vld [vmem:[%s4762_s4 + $0x200] sm:$0xff]  ;;  %v1801_v14 = vld [vmem:[%s4762_s4 + $0x290] sm:$0xff]  ;;  %v1802_v15 = vld [vmem:[%s4762_s4 + $0x298] sm:$0xff] }
 0x48f   : > { %3331 = vrot.lane.b32.xlu1 %v3315_v6, %s3381_s16  ;;  %v3345_v37 = vpack.i.bf16 %v1563_v49, %v1561_v48  ;;  %v3350_v55 = vpack.i.bf16 %v1650_v53, %v1648_v52  ;;  %v1679_v57 = vsel %vm838_vm15, %v1677_v50, %v4464_v20  ;;  %v1682_v58 = vsel %vm838_vm15, %v1680_v51, %v1645_v23  ;;  %v1529_v6 = vld [vmem:[#allocation3 + $0x20] sm:$0x1]  ;;  %v1817_v19 = vld [vmem:[%s4762_s4 + $0x310] sm:$0xff]  ;;  %v1835_v29 = vld [vmem:[%s4762_s4 + $0x3a0] sm:$0xff] }
 0x490   : > { %v1684_v59 = vsel %vm838_vm15, %v4464_v20, %v1683_v31  ;;  %v1686_v61 = vsel %vm838_vm15, %v1645_v23, %v1685_v54  ;;  %v3355_v39 = vpack.i.bf16 %v1682_v58, %v1679_v57  ;;  %v3166_v11 = vpack.c.bf16 %v1816_v5, %v1815_v4  ;;  %v1818_v21 = vld [vmem:[%s4762_s4 + $0x318] sm:$0xff]  ;;  %v1785_v27 = vld [vmem:[%s4762_s4 + $0x210] sm:$0xff]  ;;  %v1836_v33 = vld [vmem:[%s4762_s4 + $0x3a8] sm:$0xff] }
 0x491   : > { %v3360_v62 = vpack.i.bf16 %v1686_v61, %v1684_v59  ;;  %v1536_v12 = vrot.slane %v1529_v6, 1  ;;  %v3134_v18 = vpack.c.bf16 %v1784_v7, %v1783_v22  ;;  %v3168_v25 = vpack.c.bf16 %v1834_v13, %v1833_v8  ;;  %v1786_v28 = vld [vmem:[%s4762_s4 + $0x218] sm:$0xff]  ;;  %v1803_v34 = vld [vmem:[%s4762_s4 + $0x2a0] sm:$0xff]  ;;  %v1804_v35 = vld [vmem:[%s4762_s4 + $0x2a8] sm:$0xff] }
 0x492   : > { %3336 = vrot.lane.b32.xlu0 %v3335_v47, %s3375_s14  ;;  %v3136_v26 = vpack.c.bf16 %v1802_v15, %v1801_v14  ;;  %v3170_v42 = vpack.c.bf16 %v1818_v21, %v1817_v19  ;;  %v1819_v47 = vld [vmem:[%s4762_s4 + $0x320] sm:$0xff]  ;;  %v1820_v48 = vld [vmem:[%s4762_s4 + $0x328] sm:$0xff]  ;;  %v3172_v49 = vpack.c.bf16 %v1836_v33, %v1835_v29  ;;  %v1837_v52 = vld [vmem:[%s4762_s4 + $0x3b0] sm:$0xff] }
 0x493   : > { %3341 = vrot.lane.b32.xlu1 %v3340_v46, %s3381_s16  ;;  %v1537_v0 = vsel %vm750_vm14, %v4450_v60, %v1536_v12  ;;  %v3138_v46 = vpack.c.bf16 %v1786_v28, %v1785_v27  ;;  %v3140_v60 = vpack.c.bf16 %v1804_v35, %v1803_v34  ;;  %v1787_v50 = vld [vmem:[%s4762_s4 + $0x220] sm:$0xff]  ;;  %v1788_v51 = vld [vmem:[%s4762_s4 + $0x228] sm:$0xff]  ;;  %v1838_v31 = vld [vmem:[%s4762_s4 + $0x3b8] sm:$0xff]  ;;  %v3174_v58 = vpack.c.bf16 %v1820_v48, %v1819_v47 }
 0x494   : > { %v1805_v54 = vld [vmem:[%s4762_s4 + $0x2b0] sm:$0xff]  ;;  %v1822_v4 = vld [vmem:[%s4762_s4 + $0x338] sm:$0xff]  ;;  %v3176_v5 = vpack.c.bf16 %v1838_v31, %v1837_v52  ;;  %v1839_v7 = vld [vmem:[%s4762_s4 + $0x3c0] sm:$0xff] }
 0x495   : > { %v1790_v22 = vld [vmem:[%s4762_s4 + $0x238] sm:$0xff]  ;;  %v1840_v8 = vld [vmem:[%s4762_s4 + $0x3c8] sm:$0xff]  ;;  %v1825_v33 = vld [vmem:[%s4762_s4 + $0x350] sm:$0xff] }
 0x496   : > { %3346 = vrot.lane.b32.xlu0 %v3345_v37, %s3375_s14  ;;  %v1806_v37 = vld [vmem:[%s4762_s4 + $0x2b8] sm:$0xff]  ;;  %v1808_v12 = vld [vmem:[%s4762_s4 + $0x2c8] sm:$0xff]  ;;  %v1793_v35 = vld [vmem:[%s4762_s4 + $0x250] sm:$0xff] }
 0x497   : > { %3351 = vrot.lane.b32.xlu1 %v3350_v55, %s3375_s14  ;;  %v3144_v6 = vpack.c.bf16 %v1806_v37, %v1805_v54  ;;  %v1810_v27 = vld [vmem:[%s4762_s4 + $0x2d8] sm:$0xff]  ;;  %v1827_v48 = vld [vmem:[%s4762_s4 + $0x360] sm:$0xff]  ;;  %v1845_v52 = vld [vmem:[%s4762_s4 + $0x3f0] sm:$0xff] }
 0x498   : > { %v1826_v34 = vld [vmem:[%s4762_s4 + $0x358] sm:$0xff]  ;;  %v1813_v54 = vld [vmem:[%s4762_s4 + $0x2f0] sm:$0xff] }
 0x499   : > { %v1846_v31 = vld [vmem:[%s4762_s4 + $0x3f8] sm:$0xff] }
 0x49a   : > { %3356 = vrot.lane.b32.xlu0 %v3355_v39, %s3381_s16  ;;  %v3142_v39 = vpack.c.bf16 %v1788_v51, %v1787_v50  ;;  %v1796_v51 = vld [vmem:[%s4762_s4 + $0x268] sm:$0xff]  ;;  %v1814_v37 = vld [vmem:[%s4762_s4 + $0x2f8] sm:$0xff] }
 0x49b   : > { %3361 = vrot.lane.b32.xlu1 %v3360_v62, %s3381_s16  ;;  %v1821_v62 = vld [vmem:[%s4762_s4 + $0x330] sm:$0xff] }
 0x49c   : > { %v3178_v15 = vpack.c.bf16 %v1822_v4, %v1821_v62  ;;  %v1797_v62 = vld [vmem:[%s4762_s4 + $0x270] sm:$0xff]  ;;  %v1798_v4 = vld [vmem:[%s4762_s4 + $0x278] sm:$0xff] }
 0x4f8   : > { %v3312_v9 = vpop.permute.xlu1 %3311  ;;  %v3307_v10 = vpop.permute.xlu0 %3306 }
 0x4f9   : > { %v3314_v16 = vunpack.i.h.bf16 %v3312_v9  ;;  %v3313_v1 = vunpack.i.l.bf16 %v3312_v9  ;;  %v3309_v45 = vunpack.i.h.bf16 %v3307_v10  ;;  %v3308_v17 = vunpack.i.l.bf16 %v3307_v10 }
 0x4fb   : > { %v1521_v23 = vsel %vm737_vm1, %v3313_v1, %v3314_v16  ;;  %v1499_v24 = vsel %vm714_vm0, %v3308_v17, %v3309_v45  ;;  %v3180_v1 = vpack.c.bf16 %v1840_v8, %v1839_v7  ;;  %v1823_v45 = vld [vmem:[%s4762_s4 + $0x340] sm:$0xff]  ;;  %v1824_v17 = vld [vmem:[%s4762_s4 + $0x348] sm:$0xff] }
 0x4fc   : > { %2003 = vmatmul.mubr.f32.vlgmr.msra.gmra.mrb[14].mxu1 %v1521_v23  ;;  %v3317_v30 = vpop.permute.xlu0 %3316  ;;  %1927 = vmatprep.mubr.f32.mxu0 %v1499_v24  ;;  %v1792_v23 = vld [vmem:[%s4762_s4 + $0x248] sm:$0xff]  ;;  %v1841_v24 = vld [vmem:[%s4762_s4 + $0x3d0] sm:$0xff]  ;;  %v3182_v28 = vpack.c.bf16 %v1824_v17, %v1823_v45  ;;  %v1850_v45 = vld [vmem:[%s4762_s4 + $0x418] sm:$0xff] }
 0x4fd   : > { %v3322_v36 = vpop.permute.xlu1 %3321  ;;  %3167 = vmatpush3.bf16.msra.mxu1 %v3166_v11  ;;  %v3319_v38 = vunpack.i.h.bf16 %v3317_v30  ;;  %v3318_v41 = vunpack.i.l.bf16 %v3317_v30  ;;  %1928 = vmatmul.mubr.f32.vlgmr.msra.gmra.mrb[14].mxu0 %v4444_v32  ;;  %v1807_v11 = vld [vmem:[%s4762_s4 + $0x2c0] sm:$0xff] }
 0x4fe   : > { %v3324_v43 = vunpack.i.h.bf16 %v3322_v36  ;;  %v3323_v44 = vunpack.i.l.bf16 %v3322_v36  ;;  %2007 = vmatprep.mubr.f32.mxu1 %v1537_v0  ;;  %3135 = vmatpush3.bf16.msra.mxu0 %v3134_v18  ;;  %v1791_v18 = vld [vmem:[%s4762_s4 + $0x240] sm:$0xff]  ;;  %v3148_v21 = vpack.c.bf16 %v1808_v12, %v1807_v11  ;;  %v1844_v0 = vld [vmem:[%s4762_s4 + $0x3e8] sm:$0xff] }
 0x4ff   : > { %3169 = vmatprep.subr.bf16.mxu1 %v3168_v25  ;;  %v1500_v32 = vsel %vm714_vm0, %v3318_v41, %v3319_v38  ;;  %3137 = vmatprep.subr.bf16.mxu0 %v3136_v26  ;;  %v1842_v25 = vld [vmem:[%s4762_s4 + $0x3d8] sm:$0xff]  ;;  %v1809_v26 = vld [vmem:[%s4762_s4 + $0x2d0] sm:$0xff]  ;;  %v3150_v29 = vpack.c.bf16 %v1792_v23, %v1791_v18  ;;  %v1843_v41 = vld [vmem:[%s4762_s4 + $0x3e0] sm:$0xff] }
 0x500   : > { %v4563_v53 = vpop.permute.xlu0 %3326  ;;  %1932 = vmatprep.mubr.f32.mxu0 %v1500_v32  ;;  %v1608_v57 = vsel %vm737_vm1, %v3323_v44, %v3324_v43  ;;  %v3184_v30 = vpack.c.bf16 %v1842_v25, %v1841_v24  ;;  %v3152_v36 = vpack.c.bf16 %v1810_v27, %v1809_v26  ;;  %v1794_v38 = vld [vmem:[%s4762_s4 + $0x258] sm:$0xff]  ;;  %v1812_v43 = vld [vmem:[%s4762_s4 + $0x2e8] sm:$0xff]  ;;  %v3186_v44 = vpack.c.bf16 %v1826_v34, %v1825_v33 }
 0x501   : > { %3171 = vmatpush3.bf16.msra.mxu1 %v3170_v42  ;;  %v3332_v55 = vpop.permute.xlu1 %3331  ;;  %1933 = vmatmul.mubr.f32.gmra.mrb[16].mxu0 %v4447_v56  ;;  %v1789_v56 = vld [vmem:[%s4762_s4 + $0x230] sm:$0xff]  ;;  %v1811_v42 = vld [vmem:[%s4762_s4 + $0x2e0] sm:$0xff]  ;;  %v3188_v47 = vpack.c.bf16 %v1844_v0, %v1843_v41  ;;  %v1828_v32 = vld [vmem:[%s4762_s4 + $0x368] sm:$0xff]  ;;  %v3329_v12 = vunpack.i.h.bf16 %v4563_v53 }
 0x502   : > { %v3334_v59 = vunpack.i.h.bf16 %v3332_v55  ;;  %v3333_v61 = vunpack.i.l.bf16 %v3332_v55  ;;  %3139 = vmatpush3.bf16.msra.mxu0 %v3138_v46  ;;  %2077 = vmatprep.mubr.f32.mxu0 %v1608_v57  ;;  %v3146_v16 = vpack.c.bf16 %v1790_v22, %v1789_v56  ;;  %v3154_v46 = vpack.c.bf16 %v1794_v38, %v1793_v35  ;;  %v1848_v22 = vld [vmem:[%s4762_s4 + $0x408] sm:$0xff]  ;;  %v1853_v41 = vld [vmem:[%s4762_s4 + $0x430] sm:$0xff]  ;;  %v1854_v0 = vld [vmem:[%s4762_s4 + $0x438] sm:$0xff] }
 0x503   : > { %3173 = vmatprep.subr.bf16.mxu1 %v3172_v49  ;;  %3141 = vmatprep.subr.bf16.mxu0 %v3140_v60  ;;  %v1795_v49 = vld [vmem:[%s4762_s4 + $0x260] sm:$0xff]  ;;  %v3156_v50 = vpack.c.bf16 %v1812_v43, %v1811_v42  ;;  %v3190_v55 = vpack.c.bf16 %v1828_v32, %v1827_v48  ;;  %v1858_v48 = vld [vmem:[%s4762_s4 + $0x458] sm:$0xff] }
 0x504   : > { %v1522_v9 = vsel %vm737_vm1, %v3333_v61, %v3334_v59  ;;  %v3337_v10 = vpop.permute.xlu0 %3336  ;;  %v3158_v57 = vpack.c.bf16 %v1796_v51, %v1795_v49  ;;  %v1829_v59 = vld [vmem:[%s4762_s4 + $0x370] sm:$0xff]  ;;  %v1830_v61 = vld [vmem:[%s4762_s4 + $0x378] sm:$0xff]  ;;  %v1855_v43 = vld [vmem:[%s4762_s4 + $0x440] sm:$0xff] }
 0x505   : > { %3175 = vmatpush3.bf16.msra.mxu1 %v3174_v58  ;;  %v3339_v13 = vunpack.i.h.bf16 %v3337_v10  ;;  %v3338_v14 = vunpack.i.l.bf16 %v3337_v10  ;;  %v3342_v60 = vpop.permute.xlu1 %3341  ;;  %v3192_v58 = vpack.c.bf16 %v1846_v31, %v1845_v52  ;;  %v3194_v8 = vpack.c.bf16 %v1830_v61, %v1829_v59  ;;  %v1859_v49 = vld [vmem:[%s4762_s4 + $0x460] sm:$0xff]  ;;  %v1861_v51 = vld [vmem:[%s4762_s4 + $0x470] sm:$0xff]  ;;  %v1862_v52 = vld [vmem:[%s4762_s4 + $0x478] sm:$0xff] }
 0x506   : > { %2008 = vmatmul.mubr.f32.gmra.mrb[16].mxu1 %v1522_v9  ;;  %3143 = vmatpush3.bf16.msra.mxu0 %v3142_v39  ;;  %v3160_v39 = vpack.c.bf16 %v1814_v37, %v1813_v54  ;;  %v3162_v9 = vpack.c.bf16 %v1798_v4, %v1797_v62  ;;  %v3344_v17 = vunpack.i.h.bf16 %v3342_v60  ;;  %v3343_v18 = vunpack.i.l.bf16 %v3342_v60  ;;  %v1860_v60 = vld [vmem:[%s4762_s4 + $0x468] sm:$0xff] }
 0x507   : > { %3177 = vmatprep.subr.bf16.mxu1 %v3176_v5  ;;  %3145 = vmatprep.subr.bf16.mxu0 %v3144_v6  ;;  %v1659_v19 = vsel %vm714_vm0, %v3338_v14, %v3339_v13  ;;  %v1614_v5 = vld [vmem:[#allocation3] sm:$0xfc]  ;;  %v1847_v6 = vld [vmem:[%s4762_s4 + $0x400] sm:$0xff]  ;;  %v3328_v13 = vunpack.i.l.bf16 %v4563_v53  ;;  %v3224_v31 = vpack.c.bf16 %v1862_v52, %v1861_v51 }
 0x508   : > { %2152 = vmatprep.mubr.f32.mxu1 %v1659_v19  ;;  %v3347_v56 = vpop.permute.xlu0 %3346  ;;  %v1620_v10 = vrot.slane %v1614_v5, 2  ;;  %v3196_v11 = vpack.c.bf16 %v1848_v22, %v1847_v6  ;;  %v1609_v34 = vsel %vm737_vm1, %v3343_v18, %v3344_v17 }
 0x509   : > { %3179 = vmatpush3.bf16.msra.mxu1 %v3178_v15  ;;  %v3352_v7 = vpop.permute.xlu1 %3351  ;;  %v3349_v24 = vunpack.i.h.bf16 %v3347_v56  ;;  %v3348_v25 = vunpack.i.l.bf16 %v3347_v56  ;;  %v1572_v26 = vsel %vm714_vm0, %v3328_v13, %v3329_v12 }
 0x50a   : > { %3147 = vmatpush3.bf16.msra.mxu0 %v3146_v16  ;;  %3181 = vmatprep.subr.bf16.mxu1 %v3180_v1  ;;  %v3354_v14 = vunpack.i.h.bf16 %v3352_v7  ;;  %v3353_v15 = vunpack.i.l.bf16 %v3352_v7  ;;  %v1616_v16 = vld [vmem:[#allocation3 + $0x20] sm:$0x3]  ;;  %v1849_v1 = vld [vmem:[%s4762_s4 + $0x410] sm:$0xff] }
 0x50b   : > { %3149 = vmatprep.subr.bf16.mxu0 %v3148_v21  ;;  %v1622_v21 = vsel %vm838_vm15, %v1620_v10, %v4464_v20  ;;  %v1623_v53 = vrot.slane %v1616_v16, 2  ;;  %v3200_v23 = vpack.c.bf16 %v1850_v45, %v1849_v1  ;;  %v1573_v38 = vsel %vm714_vm0, %v3348_v25, %v3349_v24 }
 0x50c   : > { %v3357_v19 = vpop.permute.xlu0 %3356  ;;  %v1660_v27 = vsel %vm714_vm0, %v3353_v15, %v3354_v14 }
 0x50d   : > { %3183 = vmatpush3.bf16.msra.mxu1 %v3182_v28  ;;  %v1851_v28 = vld [vmem:[%s4762_s4 + $0x420] sm:$0xff]  ;;  %v3358_v33 = vunpack.i.l.bf16 %v3357_v19  ;;  %v1624_v35 = vsel %vm838_vm15, %v4464_v20, %v1623_v53  ;;  %v3208_v20 = vpack.c.bf16 %v1854_v0, %v1853_v41  ;;  %v3362_v54 = vpop.permute.xlu1 %3361 }
 0x50e   : > { %3151 = vmatpush3.bf16.msra.mxu0 %v3150_v29  ;;  %3185 = vmatprep.subr.bf16.mxu1 %v3184_v30  ;;  %v1852_v29 = vld [vmem:[%s4762_s4 + $0x428] sm:$0xff]  ;;  %v3359_v30 = vunpack.i.h.bf16 %v3357_v19  ;;  %v3364_v37 = vunpack.i.h.bf16 %v3362_v54 }
 0x50f   : > { %3153 = vmatprep.subr.bf16.mxu0 %v3152_v36  ;;  %v3204_v36 = vpack.c.bf16 %v1852_v29, %v1851_v28 }
 0x510   : > { %v1695_v42 = vsel %vm737_vm1, %v3358_v33, %v3359_v30 }
 0x511   : > { %3187 = vmatpush3.bf16.msra.mxu1 %v3186_v44  ;;  %v1856_v44 = vld [vmem:[%s4762_s4 + $0x448] sm:$0xff] }
 0x512   : > { %3155 = vmatpush3.bf16.msra.mxu0 %v3154_v46  ;;  %3189 = vmatprep.subr.bf16.mxu1 %v3188_v47  ;;  %v3212_v46 = vpack.c.bf16 %v1856_v44, %v1855_v43  ;;  %v1857_v47 = vld [vmem:[%s4762_s4 + $0x450] sm:$0xff] }
 0x513   : > { %3157 = vmatprep.subr.bf16.mxu0 %v3156_v50  ;;  %v3216_v32 = vpack.c.bf16 %v1858_v48, %v1857_v47  ;;  %v3220_v50 = vpack.c.bf16 %v1860_v60, %v1859_v49 }
 0x515   : > { %3191 = vmatpush3.bf16.msra.mxu1 %v3190_v55  ;;  %v3363_v55 = vunpack.i.l.bf16 %v3362_v54 }
 0x516   : > { %3159 = vmatpush3.bf16.msra.mxu0 %v3158_v57  ;;  %3193 = vmatprep.subr.bf16.mxu1 %v3192_v58 }
 0x517   : > { %3161 = vmatprep.subr.bf16.mxu0 %v3160_v39  ;;  %v1696_v57 = vsel %vm737_vm1, %v3363_v55, %v3364_v37 }
 0x519   : > { %3195 = vmatpush3.bf16.msra.mxu1 %v3194_v8 }
 0x51a   : > { %3163 = vmatpush3.bf16.msra.mxu0 %v3162_v9 }
 0x51b   : > { %3197 = vmatprep.subr.bf16.mxu0 %v3196_v11 }
 0x51c   : > { %2153 = vmatmul.mubr.f32.vlgmr.msra.gmra.mrb[18].mxu1 %v1622_v21 }
 0x51d   : > { %2078 = vmatmul.mubr.f32.vlgmr.msra.gmra.mrb[18].mxu0 %v1572_v26  ;;  %2157 = vmatprep.mubr.f32.mxu1 %v1660_v27 }
 0x51e   : > { %2082 = vmatprep.mubr.f32.mxu0 %v1609_v34  ;;  %3199 = vmatpush3.bf16.msra.mxu0 %v3196_v11 }
 0x51f   : > { %3201 = vmatprep.subr.bf16.mxu0 %v3200_v23 }
 0x520   : > { %2158 = vmatmul.mubr.f32.gmra.mrb[20].mxu1 %v1624_v35 }
 0x521   : > { %2083 = vmatmul.mubr.f32.gmra.mrb[20].mxu0 %v1573_v38 }
 0x522   : > { %3203 = vmatpush3.bf16.msra.mxu0 %v3200_v23  ;;  %2825 = vmatprep.mubr.f32.mxu0 %v1695_v42 }
 0x523   : > { %3205 = vmatprep.subr.bf16.mxu0 %v3204_v36 }
 0x526   : > { %3207 = vmatpush3.bf16.msra.mxu0 %v3204_v36 }
 0x527   : > { %3209 = vmatprep.subr.bf16.mxu0 %v3208_v20 }
 0x52a   : > { %3211 = vmatpush3.bf16.msra.mxu0 %v3208_v20 }
 0x52b   : > { %3213 = vmatprep.subr.bf16.mxu0 %v3212_v46 }
 0x52e   : > { %3215 = vmatpush3.bf16.msra.mxu0 %v3212_v46 }
 0x52f   : > { %3217 = vmatprep.subr.bf16.mxu0 %v3216_v32 }
 0x532   : > { %3219 = vmatpush3.bf16.msra.mxu0 %v3216_v32 }
 0x533   : > { %3221 = vmatprep.subr.bf16.mxu0 %v3220_v50 }
 0x536   : > { %3223 = vmatpush3.bf16.msra.mxu0 %v3220_v50 }
 0x537   : > { %3225 = vmatprep.subr.bf16.mxu0 %v3224_v31 }
 0x53a   : > { %3227 = vmatpush3.bf16.msra.mxu0 %v3224_v31 }
 0x53d   : > { %2826 = vmatmul.mubr.f32.vlgmr.msra.gmra.mrb[22].mxu0 %v1696_v57 }
 0x5cf   : > { %v2639_v58 = vpop.f32.mrb[14].mxu1 }
 0x5d0   : > { %v2601_v59 = vpop.f32.mrb[14].mxu0  ;;  %v2640_v61 = vpop.f32.mrb[15].mxu1 }
 0x5d1   : > { %v2641_v39 = vadd.f32 %v2640_v61, %v2639_v58  ;;  %v2602_v62 = vpop.f32.mrb[15].mxu0 }
 0x5d2   : > { %v2603_v4 = vadd.f32 %v2602_v62, %v2601_v59 }
 0x5d4   : > { %v1930_v56 = vadd.f32 %v2603_v4, %v1457_v3  ;;  %v2604_v5 = vpop.f32.mrb[16].mxu0 }
 0x5d5   : > { %v2605_v6 = vpop.f32.mrb[17].mxu0 }
 0x5d6   : > { %v2606_v22 = vadd.f32 %v2605_v6, %v2604_v5  ;;  %v2005_v7 = vadd.f32 %v2641_v39, %v1930_v56 }
 0x5d8   : > { %v1935_v8 = vadd.f32 %v2606_v22, %v1458_v2 }
 0x5d9   : > { %v2642_v9 = vpop.f32.mrb[16].mxu1 }
 0x5da   : > { %v2643_v10 = vpop.f32.mrb[17].mxu1 }
 0x5db   : > { %v2644_v11 = vadd.f32 %v2643_v10, %v2642_v9 }
 0x5dd   : > { %v2010_v12 = vadd.f32 %v2644_v11, %v1935_v8 }
 0x5ef   : > { %v2715_v13 = vpop.f32.mrb[18].mxu1 }
 0x5f0   : > { %v2677_v14 = vpop.f32.mrb[18].mxu0  ;;  %v2716_v15 = vpop.f32.mrb[19].mxu1 }
 0x5f1   : > { %v2717_v16 = vadd.f32 %v2716_v15, %v2715_v13  ;;  %v2678_v1 = vpop.f32.mrb[19].mxu0 }
 0x5f2   : > { %v2679_v45 = vadd.f32 %v2678_v1, %v2677_v14 }
 0x5f3   : > { %v2718_v63 = vpop.f32.mrb[20].mxu1 }
 0x5f4   : > { %v2080_v3 = vadd.f32 %v2679_v45, %v2005_v7  ;;  %v2680_v17 = vpop.f32.mrb[20].mxu0  ;;  %v2719_v18 = vpop.f32.mrb[21].mxu1 }
 0x5f5   : > { %v2720_v19 = vadd.f32 %v2719_v18, %v2718_v63  ;;  %v2681_v21 = vpop.f32.mrb[21].mxu0 }
 0x5f6   : > { %v2682_v53 = vadd.f32 %v2681_v21, %v2680_v17  ;;  %v2155_v40 = vadd.f32 %v2717_v16, %v2080_v3 }
 0x5f8   : > { %v2085_v2 = vadd.f32 %v2682_v53, %v2010_v12 }
 0x5fa   : > { %v2160_v23 = vadd.f32 %v2720_v19, %v2085_v2 }
 0x610   : > { %v2827_v24 = vpop.f32.mrb[22].mxu0 }
 0x611   : > { %v2235_v25 = vadd.f32 %v2827_v24, %v2160_v23  ;;  %v2229_v26 = vpop.f32.mrb[23].mxu0 }
 0x612   : > { %v2230_v27 = vadd.f32 %v2229_v26, %v2155_v40 }
 0x613   : > { %v2239_v28 = vmax.f32 %v2235_v25, 0.0 }
 0x614   : > { %v2238_v29 = vmax.f32 %v2230_v27, 0.0 }
 0x615   : > { %2241 = vst [vmem:[%s224_s11 + $0x8] sm:$0xff] %v2239_v28 }
 0x616   : > { %2240 = vst [vmem:[%s224_s11] sm:$0xff] %v2238_v29 }
 0x617 PF: > { %s15_s18 = sadd.s32 1, %s3371_s18  }
 0x618   : > { %p12_p4 = scmp.ge.s32.totalorder %s15_s18, 4  }
 0x61a   :  { %14 = sbr.rel (!%p12_p4) target bundleno = 1 (0x1), region = 70 }

</bundles_post_ra>
